<compile_context>
chip_gen: v5e
topology: v5e:2x2
jax: 0.10.0
libtpu: 0.0.40
codegen_flags: <defaults>
</compile_context>

<pallas_src>
import functools
import math

import jax
import jax.numpy as jnp
from jax import lax
from jax.experimental import pallas as pl
from jax.experimental.pallas import tpu as pltpu


def _round_up(x, m):
    return ((x + m - 1) // m) * m


def _vmem_limit(block_bytes):
    # input + output, double-buffered, plus headroom for params/metadata.
    return int(min(max(8 * block_bytes, 8 * 1024 * 1024), 64 * 1024 * 1024))


# --------------------------------------------------------------------------
# channels_last: rows = all leading dims flattened, normalize over last dim C
# --------------------------------------------------------------------------
def _ln_last_kernel(x_ref, w_ref, b_ref, o_ref, *, eps):
    x = x_ref[...].astype(jnp.float32)                    # (tm, C)
    mean = jnp.mean(x, axis=-1, keepdims=True)            # lane reduction (XLU)
    xc = x - mean
    var = jnp.mean(xc * xc, axis=-1, keepdims=True)       # biased variance
    inv = lax.rsqrt(var + eps)                            # EUP
    o_ref[...] = (xc * inv * w_ref[...] + b_ref[...]).astype(o_ref.dtype)


def layer_norm_channels_last(x, weight, bias, eps=1e-6):
    """x: (..., C); weight/bias: (C,). Matches F.layer_norm over the last dim."""
    orig_shape = x.shape
    C = orig_shape[-1]
    M = int(math.prod(orig_shape[:-1]))
    x2 = x.reshape(M, C)

    # Adaptive row tile: ~1 MiB per block, multiple of 8 sublanes, clamped.
    itemsize = x2.dtype.itemsize
    tm_target = max(8, ((1 << 20) // max(C * itemsize, 1)) // 8 * 8)
    tm = int(min(tm_target, 2048, _round_up(M, 8)))
    Mp = _round_up(M, tm)
    if Mp != M:
        # Zero rows normalize to the bias (finite); sliced away afterwards.
        x2 = jnp.pad(x2, ((0, Mp - M), (0, 0)))

    w2 = weight.reshape(1, C).astype(jnp.float32)
    b2 = bias.reshape(1, C).astype(jnp.float32)

    block_bytes = tm * C * itemsize
    out = pl.pallas_call(
        functools.partial(_ln_last_kernel, eps=eps),
        out_shape=jax.ShapeDtypeStruct((Mp, C), x.dtype),
        grid=(Mp // tm,),
        in_specs=[
            pl.BlockSpec((tm, C), lambda i: (i, 0)),
            pl.BlockSpec((1, C), lambda i: (0, 0)),
            pl.BlockSpec((1, C), lambda i: (0, 0)),
        ],
        out_specs=pl.BlockSpec((tm, C), lambda i: (i, 0)),
        compiler_params=pltpu.CompilerParams(
            dimension_semantics=("parallel",),
            vmem_limit_bytes=_vmem_limit(block_bytes),
        ),
    )(x2, w2, b2)
    return out[:M].reshape(orig_shape)


# --------------------------------------------------------------------------
# channels_first: x = (N, C, *spatial); normalize over C for every pixel
# --------------------------------------------------------------------------
def _ln_first_kernel(x_ref, w_ref, b_ref, o_ref, *, eps):
    x = x_ref[...].astype(jnp.float32)                    # (1, C, t)
    mean = jnp.mean(x, axis=1, keepdims=True)             # sublane reduction
    xc = x - mean
    var = jnp.mean(xc * xc, axis=1, keepdims=True)        # biased variance
    inv = lax.rsqrt(var + eps)                            # EUP
    o_ref[...] = (xc * inv * w_ref[...] + b_ref[...]).astype(o_ref.dtype)


def layer_norm_channels_first(x, weight, bias, eps=1e-6):
    """x: (N, C, *spatial); weight/bias: (C,). Native layout, no transposes."""
    N, C = x.shape[0], x.shape[1]
    HW = int(math.prod(x.shape[2:]))
    x3 = x.reshape(N, C, HW)                              # free reshape

    # Lane-dense spatial tile: multiple of 128, ~1 MiB per block, clamped.
    itemsize = x3.dtype.itemsize
    t_target = max(128, ((1 << 20) // max(C * itemsize, 1)) // 128 * 128)
    t = int(min(t_target, 2048, _round_up(HW, 128)))
    HWp = _round_up(HW, t)
    if HWp != HW:
        # Zero pixel columns normalize to the bias (finite); sliced away.
        x3 = jnp.pad(x3, ((0, 0), (0, 0), (0, HWp - HW)))

    w3 = weight.reshape(1, C, 1).astype(jnp.float32)
    b3 = bias.reshape(1, C, 1).astype(jnp.float32)

    block_bytes = C * t * itemsize
    out = pl.pallas_call(
        functools.partial(_ln_first_kernel, eps=eps),
        out_shape=jax.ShapeDtypeStruct((N, C, HWp), x.dtype),
        grid=(N, HWp // t),
        in_specs=[
            pl.BlockSpec((1, C, t), lambda n, j: (n, 0, j)),
            pl.BlockSpec((1, C, 1), lambda n, j: (0, 0, 0)),
            pl.BlockSpec((1, C, 1), lambda n, j: (0, 0, 0)),
        ],
        out_specs=pl.BlockSpec((1, C, t), lambda n, j: (n, 0, j)),
        compiler_params=pltpu.CompilerParams(
            dimension_semantics=("parallel", "parallel"),
            vmem_limit_bytes=_vmem_limit(block_bytes),
        ),
    )(x3, w3, b3)
    return out[:, :, :HW].reshape(x.shape)


# --------------------------------------------------------------------------
# Pure-JAX references replicating the PyTorch forward (for verification)
# --------------------------------------------------------------------------
def ref_channels_last(x, w, b, eps):
    u = jnp.mean(x, axis=-1, keepdims=True)
    s = jnp.mean((x - u) ** 2, axis=-1, keepdims=True)
    return (x - u) / jnp.sqrt(s + eps) * w + b


def ref_channels_first(x, w, b, eps):
    u = jnp.mean(x, axis=1, keepdims=True)
    s = jnp.mean((x - u) ** 2, axis=1, keepdims=True)
    xn = (x - u) / jnp.sqrt(s + eps)
    return w[None, :, None, None] * xn + b[None, :, None, None]


if __name__ == "__main__":
    key = jax.random.PRNGKey(0)
    k = jax.random.split(key, 8)
    eps = 1e-6

    # ---- channels_last, lane-dense C=128: (N, H, W, C) ----
    N, H, W, C = 2, 16, 16, 128
    weight = 1.0 + 0.1 * jax.random.normal(k[1], (C,), jnp.float32)
    bias = 0.1 * jax.random.normal(k[2], (C,), jnp.float32)
    x_last = jax.random.normal(k[0], (N, H, W, C), jnp.float32)
    out_last = jax.block_until_ready(
        layer_norm_channels_last(x_last, weight, bias, eps))
    ref_last = ref_channels_last(x_last, weight, bias, eps)
    assert out_last.shape == x_last.shape and out_last.dtype == x_last.dtype
    assert jnp.allclose(out_last, ref_last, rtol=1e-4, atol=1e-4), \
        float(jnp.max(jnp.abs(out_last - ref_last)))

    # ---- channels_first, lane-dense C=128: (N, C, H, W) ----
    x_first = jax.random.normal(k[3], (N, C, H, W), jnp.float32)
    out_first = jax.block_until_ready(
        layer_norm_channels_first(x_first, weight, bias, eps))
    ref_first = ref_channels_first(x_first, weight, bias, eps)
    assert out_first.shape == x_first.shape and out_first.dtype == x_first.dtype
    assert jnp.allclose(out_first, ref_first, rtol=1e-4, atol=1e-4), \
        float(jnp.max(jnp.abs(out_first - ref_first)))

    # ---- generality check: non-128 channels, odd spatial (padding paths) ----
    C2, H2, W2 = 96, 7, 9
    w2p = 1.0 + 0.1 * jax.random.normal(k[5], (C2,), jnp.float32)
    b2p = 0.1 * jax.random.normal(k[6], (C2,), jnp.float32)
    x_small = jax.random.normal(k[4], (2, C2, H2, W2), jnp.float32)
    out_small = jax.block_until_ready(
        layer_norm_channels_first(x_small, w2p, b2p, eps))
    ref_small = ref_channels_first(x_small, w2p, b2p, eps)
    assert jnp.allclose(out_small, ref_small, rtol=1e-4, atol=1e-4), \
        float(jnp.max(jnp.abs(out_small - ref_small)))

    x_small_last = jax.random.normal(k[7], (3, 5, C2), jnp.float32)
    out_small_last = jax.block_until_ready(
        layer_norm_channels_last(x_small_last, w2p, b2p, eps))
    ref_small_last = ref_channels_last(x_small_last, w2p, b2p, eps)
    assert jnp.allclose(out_small_last, ref_small_last, rtol=1e-4, atol=1e-4), \
        float(jnp.max(jnp.abs(out_small_last - ref_small_last)))

    print("KERNEL_OK")
</pallas_src>

<mosaic_0001>
module attributes {stable_mosaic.version = 11 : i64} {
  func.func @_ln_last_kernel(%arg0: i32, %arg1: memref<512x128xf32, #tpu.memory_space<vmem>>, %arg2: memref<1x128xf32, #tpu.memory_space<vmem>>, %arg3: memref<1x128xf32, #tpu.memory_space<vmem>>, %arg4: memref<512x128xf32, #tpu.memory_space<vmem>>) attributes {dimension_semantics = [#tpu.dimension_semantics<parallel>], iteration_bounds = array<i64: 1>, scalar_prefetch = 0 : i64, scratch_operands = 0 : i64, tpu.core_type = #tpu.core_type<tc>, window_params = [{transform_indices = @transform_0, window_bounds = array<i64: 512, 128>}, {pipeline_mode = #tpu.pipeline_mode<synchronous>, transform_indices = @transform_1, window_bounds = array<i64: 1, 128>}, {pipeline_mode = #tpu.pipeline_mode<synchronous>, transform_indices = @transform_2, window_bounds = array<i64: 1, 128>}, {transform_indices = @transform_3, window_bounds = array<i64: 512, 128>}]} {
    %c0 = arith.constant 0 : index
    %c0_0 = arith.constant 0 : index
    %0 = vector.load %arg1[%c0, %c0_0] : memref<512x128xf32, #tpu.memory_space<vmem>>, vector<512x128xf32>
    %cst = arith.constant dense<0.000000e+00> : vector<512xf32>
    %1 = vector.multi_reduction <add>, %0, %cst [1] : vector<512x128xf32> to vector<512xf32>
    %2 = vector.shape_cast %1 : vector<512xf32> to vector<512x1xf32>
    %cst_1 = arith.constant 1.280000e+02 : f32
    %3 = vector.broadcast %cst_1 : f32 to vector<512x1xf32>
    %4 = arith.divf %2, %3 : vector<512x1xf32>
    %5 = vector.broadcast %4 : vector<512x1xf32> to vector<512x128xf32>
    %6 = arith.subf %0, %5 : vector<512x128xf32>
    %7 = arith.mulf %6, %6 : vector<512x128xf32>
    %cst_2 = arith.constant dense<0.000000e+00> : vector<512xf32>
    %8 = vector.multi_reduction <add>, %7, %cst_2 [1] : vector<512x128xf32> to vector<512xf32>
    %9 = vector.shape_cast %8 : vector<512xf32> to vector<512x1xf32>
    %cst_3 = arith.constant 1.280000e+02 : f32
    %10 = vector.broadcast %cst_3 : f32 to vector<512x1xf32>
    %11 = arith.divf %9, %10 : vector<512x1xf32>
    %cst_4 = arith.constant 9.99999997E-7 : f32
    %12 = vector.broadcast %cst_4 : f32 to vector<512x1xf32>
    %13 = arith.addf %11, %12 : vector<512x1xf32>
    %14 = math.rsqrt %13 : vector<512x1xf32>
    %15 = vector.broadcast %14 : vector<512x1xf32> to vector<512x128xf32>
    %16 = arith.mulf %6, %15 : vector<512x128xf32>
    %c0_5 = arith.constant 0 : index
    %c0_6 = arith.constant 0 : index
    %17 = vector.load %arg2[%c0_5, %c0_6] : memref<1x128xf32, #tpu.memory_space<vmem>>, vector<1x128xf32>
    %18 = vector.broadcast %17 : vector<1x128xf32> to vector<512x128xf32>
    %19 = arith.mulf %16, %18 : vector<512x128xf32>
    %c0_7 = arith.constant 0 : index
    %c0_8 = arith.constant 0 : index
    %20 = vector.load %arg3[%c0_7, %c0_8] : memref<1x128xf32, #tpu.memory_space<vmem>>, vector<1x128xf32>
    %21 = vector.broadcast %20 : vector<1x128xf32> to vector<512x128xf32>
    %22 = arith.addf %19, %21 : vector<512x128xf32>
    %c0_9 = arith.constant 0 : index
    %c0_10 = arith.constant 0 : index
    %23 = vector.load %arg4[%c0_9, %c0_10] : memref<512x128xf32, #tpu.memory_space<vmem>>, vector<512x128xf32>
    tpu.vector_store %arg4[%c0_9, %c0_10], %22 {strides = array<i32>} : memref<512x128xf32, #tpu.memory_space<vmem>>, vector<512x128xf32>,
    return
  }
  func.func @transform_0(%arg0: i32) -> (i32, i32) {
    %c0_i32 = arith.constant 0 : i32
    %c0_i32_0 = arith.constant 0 : i32
    return %arg0, %c0_i32 : i32, i32
  }
  func.func @transform_1(%arg0: i32) -> (i32, i32) {
    %c0_i32 = arith.constant 0 : i32
    %c0_i32_0 = arith.constant 0 : i32
    %c0_i32_1 = arith.constant 0 : i32
    return %c0_i32, %c0_i32_0 : i32, i32
  }
  func.func @transform_2(%arg0: i32) -> (i32, i32) {
    %c0_i32 = arith.constant 0 : i32
    %c0_i32_0 = arith.constant 0 : i32
    %c0_i32_1 = arith.constant 0 : i32
    return %c0_i32, %c0_i32_0 : i32, i32
  }
  func.func @transform_3(%arg0: i32) -> (i32, i32) {
    %c0_i32 = arith.constant 0 : i32
    %c0_i32_0 = arith.constant 0 : i32
    return %arg0, %c0_i32 : i32, i32
  }
}

</mosaic_0001>

<bundles_post_ra>
// kernel: tpu_custom_call.1
= control target key start
LH: loop header
LB: loop body
LE: loop exit
PB: predicated region body
PF: predicated region fallthrough
CT: control target
= control target key end

     0   :  { %8 = vsyncpa [#allocation3], 0  ;;  %s3880_s0 = inlined_call_operand.hbm [shape: f32[512,128], index: 0, kind: input, shape index: {}]   ;;  %s3881_s1 = inlined_call_operand.hbm [shape: f32[1,128], index: 1, kind: input, shape index: {}]   ;;  %s3882_s2 = inlined_call_operand.vmem [shape: f32[1,128], index: 2, kind: input, shape index: {}]   ;;  %s3883_s3 = inlined_call_operand.hbm [shape: f32[512,128], index: 3, kind: output, shape index: {}]  }
   0x1   :  { %9 = vsyncpa [#allocation6], 0 }
   0x2   :  { %10 = vsyncpa [#allocation4], 0  ;;  %s15_s14 = sshll.u32 %s3880_s0, 4  ;;  %s1836_s15 = smov [#allocation2]   ;;  %s16_s14 = int_to_ptr.hbm [resolvable:$true] %s15_s14 }
   0x3   :  { %s17_s16 = sshll.u32 %s1836_s15, 4  ;;  %s29_s19 = sshll.u32 %s3881_s1, 4  ;;  %s18_s16 = int_to_ptr.vmem [resolvable:$true] %s17_s16  ;;  %s30_s19 = int_to_ptr.hbm [resolvable:$true] %s29_s19 }
   0x4   :  { %s1837_s20 = smov 128   ;;  %s1838_s21 = smov 8  }
   0x5   :  { %23 = dma.hbm_to_vmem [thread:$0]  %s16_s14, 8192, %s18_s16, [#allocation3], %s1837_s20, %s1837_s20, %s1838_s21  }
   0x6   :  { %s1839_s22 = smov [#allocation5]  }
   0x7   :  { %s31_s23 = sshll.u32 %s1839_s22, 4  ;;  %s32_s23 = int_to_ptr.vmem [resolvable:$true] %s31_s23 }
   0x8   :  { %34 = dma.hbm_to_vmem [thread:$0]  %s30_s19, 16, %s32_s23, [#allocation6]  }
   0x9   :  { %1830 = dma.done.wait [#allocation3], 8192  }
   0xa   :  { %1831 = vsyncadd [#allocation3], 4294959104 }
   0xb   :  { %1832 = dma.done.wait [#allocation6], 16  }
   0xc   :  { %1833 = vsyncadd [#allocation6], 4294967280  ;;  %v1871_v0 = vld [vmem:[#allocation2 + $0x20] sm:$0xff]  ;;  %v1873_v1 = vld [vmem:[#allocation2 + $0x10] sm:$0xff]  ;;  %v1840_v57 = vmov 128.0   ;;  %s1602_s4 = sshll.u32 %s3883_s3, 4  ;;  %s1603_s4 = int_to_ptr.hbm [resolvable:$true] %s1602_s4 }
   0xd   :  { %v1875_v2 = vld [vmem:[#allocation2] sm:$0xff]  ;;  %117 = vadd.xlane.f32.xlu2 %v1871_v0  ;;  %113 = vadd.xlane.f32.xlu1 %v1873_v1  ;;  %v1880_v3 = vld [vmem:[#allocation2 + $0x28] sm:$0xff]  ;;  %v1882_v4 = vld [vmem:[#allocation2 + $0x18] sm:$0xff]  ;;  %1624 = vrcp.f32 %v1840_v57 }
   0xe   :  { %109 = vadd.xlane.f32.xlu0 %v1875_v2  ;;  %v1884_v5 = vld [vmem:[#allocation2 + $0x8] sm:$0xff]  ;;  %v1889_v6 = vld [vmem:[#allocation2 + $0x40] sm:$0xff]  ;;  %v1891_v7 = vld [vmem:[#allocation2 + $0x38] sm:$0xff] }
   0xf   :  { %v1893_v8 = vld [vmem:[#allocation2 + $0x30] sm:$0xff]  ;;  %v1898_v9 = vld [vmem:[#allocation2 + $0x58] sm:$0xff]  ;;  %v1902_v11 = vld [vmem:[#allocation2 + $0x48] sm:$0xff] }
  0x10   :  { %v1900_v10 = vld [vmem:[#allocation2 + $0x50] sm:$0xff]  ;;  %v1909_v13 = vld [vmem:[#allocation2 + $0x68] sm:$0xff]  ;;  %v1911_v14 = vld [vmem:[#allocation2 + $0x60] sm:$0xff] }
  0x11   :  { %v1907_v12 = vld [vmem:[#allocation2 + $0x70] sm:$0xff]  ;;  %v1916_v15 = vld [vmem:[#allocation2 + $0x88] sm:$0xff]  ;;  %v1918_v16 = vld [vmem:[#allocation2 + $0x80] sm:$0xff] }
  0x12   :  { %v1920_v17 = vld [vmem:[#allocation2 + $0x78] sm:$0xff]  ;;  %v1925_v18 = vld [vmem:[#allocation2 + $0xa0] sm:$0xff]  ;;  %v1929_v20 = vld [vmem:[#allocation2 + $0x90] sm:$0xff] }
  0x13   :  { %v1927_v19 = vld [vmem:[#allocation2 + $0x98] sm:$0xff]  ;;  %v1936_v22 = vld [vmem:[#allocation2 + $0xb0] sm:$0xff]  ;;  %v1938_v23 = vld [vmem:[#allocation2 + $0xa8] sm:$0xff] }
  0x14   :  { %v1934_v21 = vld [vmem:[#allocation2 + $0xb8] sm:$0xff]  ;;  %v1943_v24 = vld [vmem:[#allocation2 + $0xd0] sm:$0xff]  ;;  %v1945_v25 = vld [vmem:[#allocation2 + $0xc8] sm:$0xff] }
  0x15   :  { %119 = vadd.xlane.f32.xlu2 %v1880_v3  ;;  %115 = vadd.xlane.f32.xlu1 %v1882_v4  ;;  %v1947_v26 = vld [vmem:[#allocation2 + $0xc0] sm:$0xff]  ;;  %v1952_v27 = vld [vmem:[#allocation2 + $0xe8] sm:$0xff]  ;;  %v1956_v29 = vld [vmem:[#allocation2 + $0xd8] sm:$0xff] }
  0x16   :  { %111 = vadd.xlane.f32.xlu0 %v1884_v5  ;;  %v1954_v28 = vld [vmem:[#allocation2 + $0xe0] sm:$0xff]  ;;  %v1963_v31 = vld [vmem:[#allocation2 + $0xf8] sm:$0xff]  ;;  %v1965_v32 = vld [vmem:[#allocation2 + $0xf0] sm:$0xff] }
  0x17   :  { %v1961_v30 = vld [vmem:[#allocation2 + $0x100] sm:$0xff]  ;;  %v1970_v33 = vld [vmem:[#allocation2 + $0x118] sm:$0xff]  ;;  %v1972_v34 = vld [vmem:[#allocation2 + $0x110] sm:$0xff] }
  0x18   :  { %3952 = vst [vmem:[#allocation11_spill] sm:$0xff] %v1970_v33  ;;  %v1974_v35 = vld [vmem:[#allocation2 + $0x108] sm:$0xff]  ;;  %v1979_v36 = vld [vmem:[#allocation2 + $0x130] sm:$0xff]  ;;  %v1983_v38 = vld [vmem:[#allocation2 + $0x120] sm:$0xff] }
  0x19   :  { %3953 = vst [vmem:[#allocation12_spill] sm:$0xff] %v1979_v36  ;;  %v1981_v37 = vld [vmem:[#allocation2 + $0x128] sm:$0xff]  ;;  %v1990_v40 = vld [vmem:[#allocation2 + $0x140] sm:$0xff]  ;;  %v1992_v41 = vld [vmem:[#allocation2 + $0x138] sm:$0xff] }
  0x1a   :  { %3954 = vst [vmem:[#allocation13_spill] sm:$0xff] %v1983_v38  ;;  %v1988_v39 = vld [vmem:[#allocation2 + $0x148] sm:$0xff]  ;;  %v1997_v42 = vld [vmem:[#allocation2 + $0x160] sm:$0xff]  ;;  %v1999_v43 = vld [vmem:[#allocation2 + $0x158] sm:$0xff] }
  0x1b   :  { %3955 = vst [vmem:[#allocation14_spill] sm:$0xff] %v1988_v39  ;;  %v2001_v44 = vld [vmem:[#allocation2 + $0x150] sm:$0xff]  ;;  %v2010_v48 = vld [vmem:[#allocation2 + $0x178] sm:$0xff]  ;;  %v2014_v50 = vld [vmem:[#allocation2 + $0x168] sm:$0xff] }
  0x1c   :  { %3956 = vst [vmem:[#allocation15_spill] sm:$0xff] %v1990_v40  ;;  %v2012_v49 = vld [vmem:[#allocation2 + $0x170] sm:$0xff]  ;;  %v2023_v55 = vld [vmem:[#allocation2 + $0x188] sm:$0xff]  ;;  %v2025_v56 = vld [vmem:[#allocation2 + $0x180] sm:$0xff] }
  0x1d   :  { %125 = vadd.xlane.f32.xlu2 %v1889_v6  ;;  %123 = vadd.xlane.f32.xlu1 %v1891_v7  ;;  %3957 = vst [vmem:[#allocation16_spill] sm:$0xff] %v1992_v41  ;;  %v2021_v54 = vld [vmem:[#allocation2 + $0x190] sm:$0xff]  ;;  %v2036_v61 = vld [vmem:[#allocation2 + $0x1a8] sm:$0xff]  ;;  %v2038_v62 = vld [vmem:[#allocation2 + $0x1a0] sm:$0xff] }
  0x1e   :  { %121 = vadd.xlane.f32.xlu0 %v1893_v8  ;;  %3958 = vst [vmem:[#allocation17_spill] sm:$0xff] %v1997_v42  ;;  %v2040_v63 = vld [vmem:[#allocation2 + $0x198] sm:$0xff] }
  0x1f   :  { %3959 = vst [vmem:[#allocation18_spill] sm:$0xff] %v1999_v43 }
  0x20   :  { %3960 = vst [vmem:[#allocation19_spill] sm:$0xff] %v2001_v44 }
  0x21   :  { %3961 = vst [vmem:[#allocation20_spill] sm:$0xff] %v2010_v48 }
  0x22   :  { %3962 = vst [vmem:[#allocation21_spill] sm:$0xff] %v2012_v49 }
  0x23   :  { %3963 = vst [vmem:[#allocation22_spill] sm:$0xff] %v2014_v50 }
  0x24   :  { %3964 = vst [vmem:[#allocation23_spill] sm:$0xff] %v2021_v54 }
  0x25   :  { %131 = vadd.xlane.f32.xlu2 %v1898_v9  ;;  %129 = vadd.xlane.f32.xlu1 %v1900_v10  ;;  %3965 = vst [vmem:[#allocation24_spill] sm:$0xff] %v2023_v55 }
  0x26   :  { %127 = vadd.xlane.f32.xlu0 %v1902_v11  ;;  %3966 = vst [vmem:[#allocation25_spill] sm:$0xff] %v2025_v56 }
  0x27   :  { %3967 = vst [vmem:[#allocation26_spill] sm:$0xff] %v2036_v61 }
  0x28   :  { %3968 = vst [vmem:[#allocation27_spill] sm:$0xff] %v2038_v62 }
  0x29   :  { %3969 = vst [vmem:[#allocation28_spill] sm:$0xff] %v2040_v63 }
  0x2d   :  { %137 = vadd.xlane.f32.xlu2 %v1907_v12  ;;  %135 = vadd.xlane.f32.xlu1 %v1909_v13 }
  0x2e   :  { %133 = vadd.xlane.f32.xlu0 %v1911_v14 }
  0x35   :  { %143 = vadd.xlane.f32.xlu2 %v1916_v15  ;;  %141 = vadd.xlane.f32.xlu1 %v1918_v16 }
  0x36   :  { %139 = vadd.xlane.f32.xlu0 %v1920_v17 }
  0x3d   :  { %149 = vadd.xlane.f32.xlu2 %v1925_v18  ;;  %147 = vadd.xlane.f32.xlu1 %v1927_v19 }
  0x3e   :  { %145 = vadd.xlane.f32.xlu0 %v1929_v20 }
  0x45   :  { %155 = vadd.xlane.f32.xlu2 %v1934_v21  ;;  %153 = vadd.xlane.f32.xlu1 %v1936_v22 }
  0x46   :  { %151 = vadd.xlane.f32.xlu0 %v1938_v23 }
  0x4d   :  { %161 = vadd.xlane.f32.xlu2 %v1943_v24  ;;  %159 = vadd.xlane.f32.xlu1 %v1945_v25 }
  0x4e   :  { %157 = vadd.xlane.f32.xlu0 %v1947_v26 }
  0x55   :  { %167 = vadd.xlane.f32.xlu2 %v1952_v27  ;;  %165 = vadd.xlane.f32.xlu1 %v1954_v28 }
  0x56   :  { %163 = vadd.xlane.f32.xlu0 %v1956_v29 }
  0x5d   :  { %173 = vadd.xlane.f32.xlu2 %v1961_v30  ;;  %171 = vadd.xlane.f32.xlu1 %v1963_v31 }
  0x5e   :  { %169 = vadd.xlane.f32.xlu0 %v1965_v32 }
  0x65   :  { %179 = vadd.xlane.f32.xlu2 %v1970_v33  ;;  %177 = vadd.xlane.f32.xlu1 %v1972_v34  ;;  %v2085_v33 = vld [vmem:[#allocation2 + $0x1e8] sm:$0xff] }
  0x66   :  { %175 = vadd.xlane.f32.xlu0 %v1974_v35  ;;  %3977 = vst [vmem:[#allocation36_spill] sm:$0xff] %v2085_v33 }
  0x6d   :  { %185 = vadd.xlane.f32.xlu2 %v1979_v36  ;;  %183 = vadd.xlane.f32.xlu1 %v1981_v37  ;;  %v2068_v36 = vld [vmem:[#allocation2 + $0x1d0] sm:$0xff] }
  0x6e   :  { %181 = vadd.xlane.f32.xlu0 %v1983_v38  ;;  %3974 = vst [vmem:[#allocation33_spill] sm:$0xff] %v2068_v36  ;;  %v2089_v38 = vld [vmem:[#allocation2 + $0x1e0] sm:$0xff] }
  0x6f   :  { %3978 = vst [vmem:[#allocation37_spill] sm:$0xff] %v2089_v38 }
  0x75   :  { %191 = vadd.xlane.f32.xlu2 %v1988_v39  ;;  %189 = vadd.xlane.f32.xlu1 %v1990_v40  ;;  %v2083_v40 = vld [vmem:[#allocation2 + $0x1f0] sm:$0xff] }
  0x76   :  { %187 = vadd.xlane.f32.xlu0 %v1992_v41  ;;  %v2070_v41 = vld [vmem:[#allocation2 + $0x1c8] sm:$0xff]  ;;  %3976 = vst [vmem:[#allocation35_spill] sm:$0xff] %v2083_v40 }
  0x77   :  { %3975 = vst [vmem:[#allocation34_spill] sm:$0xff] %v2070_v41 }
  0x7d   :  { %197 = vadd.xlane.f32.xlu2 %v1997_v42  ;;  %195 = vadd.xlane.f32.xlu1 %v1999_v43  ;;  %v2055_v42 = vld [vmem:[#allocation2 + $0x1b0] sm:$0xff]  ;;  %v2066_v43 = vld [vmem:[#allocation2 + $0x1d8] sm:$0xff] }
  0x7e   :  { %193 = vadd.xlane.f32.xlu0 %v2001_v44  ;;  %3972 = vst [vmem:[#allocation31_spill] sm:$0xff] %v2055_v42 }
  0x7f   :  { %3973 = vst [vmem:[#allocation32_spill] sm:$0xff] %v2066_v43 }
  0x80   :  { %v2006_v45 = vpop.xlane.xlu2 %117  ;;  %v2008_v46 = vpop.xlane.xlu1 %113 }
  0x81   :  { %v110_v47 = vpop.xlane.xlu0 %109 }
  0x85   :  { %203 = vadd.xlane.f32.xlu2 %v2010_v48  ;;  %201 = vadd.xlane.f32.xlu1 %v2012_v49  ;;  %v1625_v48 = vpop.eup %1624  ;;  %v2053_v49 = vld [vmem:[#allocation2 + $0x1b8] sm:$0xff] }
  0x86   :  { %199 = vadd.xlane.f32.xlu0 %v2014_v50  ;;  %v238_v57 = vmul.f32 128.0, %v1625_v48  ;;  %v2051_v50 = vld [vmem:[#allocation2 + $0x1c0] sm:$0xff]  ;;  %3971 = vst [vmem:[#allocation30_spill] sm:$0xff] %v2053_v49  ;;  %vm242_vm0 = vweird.f32 %v1625_v48 }
  0x87   :  { %3970 = vst [vmem:[#allocation29_spill] sm:$0xff] %v2051_v50 }
  0x88   :  { %v2019_v51 = vpop.xlane.xlu2 %119  ;;  %v116_v52 = vpop.xlane.xlu1 %115  ;;  %v239_v39 = vsub.f32 1.0, %v238_v57 }
  0x89   :  { %v112_v53 = vpop.xlane.xlu0 %111 }
  0x8d   :  { %209 = vadd.xlane.f32.xlu2 %v2021_v54  ;;  %207 = vadd.xlane.f32.xlu1 %v2023_v55 }
  0x8e   :  { %205 = vadd.xlane.f32.xlu0 %v2025_v56 }
  0x90   :  { %v2030_v58 = vpop.xlane.xlu2 %125  ;;  %v2032_v59 = vpop.xlane.xlu1 %123 }
  0x91   :  { %v2034_v60 = vpop.xlane.xlu0 %121 }
  0x95   :  { %215 = vadd.xlane.f32.xlu2 %v2036_v61  ;;  %213 = vadd.xlane.f32.xlu1 %v2038_v62 }
  0x96   :  { %211 = vadd.xlane.f32.xlu0 %v2040_v63  ;;  %v240_v63 = vmul.f32 %v1625_v48, %v239_v39 }
  0x98   :  { %v2045_v56 = vpop.xlane.xlu2 %131  ;;  %v2047_v54 = vpop.xlane.xlu1 %129  ;;  %v241_v57 = vadd.f32 %v1625_v48, %v240_v63 }
  0x99   :  { %v2049_v55 = vpop.xlane.xlu0 %127 }
  0x9a   :  { %v2075_v39 = vsel %vm242_vm0, %v1625_v48, %v241_v57 }
  0x9b   :  { %v244_v63 = vmul.f32 %v2075_v39, %v110_v47 }
  0x9d   :  { %221 = vadd.xlane.f32.xlu2 %v2051_v50  ;;  %219 = vadd.xlane.f32.xlu1 %v2053_v49  ;;  %v2095_v48 = vsub.f32 %v1875_v2, %v244_v63 }
  0x9e   :  { %217 = vadd.xlane.f32.xlu0 %v2055_v42 }
  0x9f   :  { %3979 = vst [vmem:[#allocation38_spill] sm:$0xff] %v2095_v48  ;;  %v372_v2 = vmul.f32 %v2095_v48, %v2095_v48 }
  0xa0   :  { %v2060_v61 = vpop.xlane.xlu2 %137  ;;  %v2062_v62 = vpop.xlane.xlu1 %135 }
  0xa1   :  { %v2064_v44 = vpop.xlane.xlu0 %133 }
  0xa5   :  { %227 = vadd.xlane.f32.xlu2 %v2066_v43  ;;  %225 = vadd.xlane.f32.xlu1 %v2068_v36  ;;  %v245_v43 = vmul.f32 %v2075_v39, %v112_v53  ;;  %v248_v53 = vmul.f32 %v2075_v39, %v2006_v45 }
  0xa6   :  { %223 = vadd.xlane.f32.xlu0 %v2070_v41 }
  0xa7   :  { %v2098_v57 = vsub.f32 %v1884_v5, %v245_v43  ;;  %v246_v43 = vmul.f32 %v2075_v39, %v2008_v46  ;;  %v2119_v63 = vsub.f32 %v1871_v0, %v248_v53  ;;  %v251_v46 = vmul.f32 %v2075_v39, %v2032_v59 }
  0xa8   :  { %v2077_v42 = vpop.xlane.xlu2 %143  ;;  %v2079_v50 = vpop.xlane.xlu1 %141 }
  0xa9   :  { %v2081_v49 = vpop.xlane.xlu0 %139  ;;  %3980 = vst [vmem:[#allocation39_spill] sm:$0xff] %v2098_v57  ;;  %v373_v5 = vmul.f32 %v2098_v57, %v2098_v57  ;;  %v2146_v59 = vsub.f32 %v1891_v7, %v251_v46 }
  0xab   :  { %v379_v7 = vmul.f32 %v2146_v59, %v2146_v59 }
  0xad   :  { %233 = vadd.xlane.f32.xlu2 %v2083_v40  ;;  %231 = vadd.xlane.f32.xlu1 %v2085_v33  ;;  %v247_v40 = vmul.f32 %v2075_v39, %v116_v52  ;;  %v2109_v33 = vld [vmem:[#allocation2 + $0x1f8] sm:$0xff]  ;;  %v2125_v52 = vsub.f32 %v1873_v1, %v246_v43  ;;  %v249_v1 = vmul.f32 %v2075_v39, %v2019_v51 }
  0xae   :  { %229 = vadd.xlane.f32.xlu0 %v2089_v38 }
  0xaf   :  { %v2122_v45 = vsub.f32 %v1882_v4, %v247_v40  ;;  %v376_v4 = vmul.f32 %v2119_v63, %v2119_v63  ;;  %v374_v40 = vmul.f32 %v2125_v52, %v2125_v52  ;;  %v2152_v53 = vsub.f32 %v1880_v3, %v249_v1 }
  0xb0   :  { %v2100_v41 = vpop.xlane.xlu2 %149  ;;  %v2102_v36 = vpop.xlane.xlu1 %147  ;;  %v252_v3 = vmul.f32 %v2075_v39, %v2030_v58 }
  0xb1   :  { %v2104_v47 = vpop.xlane.xlu0 %145  ;;  %v375_v0 = vmul.f32 %v2122_v45, %v2122_v45  ;;  %v377_v46 = vmul.f32 %v2152_v53, %v2152_v53 }
  0xb5   :  { %436 = vadd.xlane.f32.xlu1 %v372_v2  ;;  %438 = vadd.xlane.f32.xlu2 %v373_v5  ;;  %v250_v2 = vmul.f32 %v2075_v39, %v2034_v60 }
  0xb6   :  { %235 = vadd.xlane.f32.xlu0 %v2109_v33 }
  0xb7   :  { %v2149_v60 = vsub.f32 %v1893_v8, %v250_v2  ;;  %v2179_v2 = vsub.f32 %v1889_v6, %v252_v3  ;;  %v255_v6 = vmul.f32 %v2075_v39, %v2045_v56 }
  0xb8   :  { %v2127_v48 = vpop.xlane.xlu2 %155  ;;  %v2129_v38 = vpop.xlane.xlu1 %153 }
  0xb9   :  { %v2131_v57 = vpop.xlane.xlu0 %151  ;;  %v378_v8 = vmul.f32 %v2149_v60, %v2149_v60 }
  0xbd   :  { %442 = vadd.xlane.f32.xlu1 %v375_v0  ;;  %444 = vadd.xlane.f32.xlu2 %v376_v4  ;;  %v254_v0 = vmul.f32 %v2075_v39, %v2047_v54  ;;  %v253_v4 = vmul.f32 %v2075_v39, %v2049_v55 }
  0xbe   :  { %440 = vadd.xlane.f32.xlu0 %v374_v40 }
  0xbf   :  { %v2173_v54 = vsub.f32 %v1900_v10, %v254_v0  ;;  %v2176_v55 = vsub.f32 %v1902_v11, %v253_v4  ;;  %v380_v0 = vmul.f32 %v2179_v2, %v2179_v2  ;;  %v2206_v4 = vsub.f32 %v1898_v9, %v255_v6 }
  0xc0   :  { %v2154_v5 = vpop.xlane.xlu2 %161  ;;  %v2156_v43 = vpop.xlane.xlu1 %159  ;;  %v258_v9 = vmul.f32 %v2075_v39, %v2060_v61 }
  0xc1   :  { %v2158_v51 = vpop.xlane.xlu0 %157  ;;  %v382_v10 = vmul.f32 %v2173_v54, %v2173_v54  ;;  %v381_v11 = vmul.f32 %v2176_v55, %v2176_v55 }
  0xc5   :  { %450 = vadd.xlane.f32.xlu2 %v379_v7  ;;  %448 = vadd.xlane.f32.xlu1 %v378_v8  ;;  %v257_v7 = vmul.f32 %v2075_v39, %v2062_v62  ;;  %v256_v8 = vmul.f32 %v2075_v39, %v2064_v44 }
  0xc6   :  { %446 = vadd.xlane.f32.xlu0 %v377_v46 }
  0xc7   :  { %v2200_v62 = vsub.f32 %v1909_v13, %v257_v7  ;;  %v2203_v44 = vsub.f32 %v1911_v14, %v256_v8  ;;  %v383_v7 = vmul.f32 %v2206_v4, %v2206_v4  ;;  %v2233_v8 = vsub.f32 %v1907_v12, %v258_v9 }
  0xc8   :  { %v2181_v1 = vpop.xlane.xlu2 %167  ;;  %v2183_v40 = vpop.xlane.xlu1 %165  ;;  %v261_v12 = vmul.f32 %v2075_v39, %v2077_v42 }
  0xc9   :  { %v2185_v58 = vpop.xlane.xlu0 %163  ;;  %v385_v13 = vmul.f32 %v2200_v62, %v2200_v62  ;;  %v384_v14 = vmul.f32 %v2203_v44, %v2203_v44 }
  0xcd   :  { %456 = vadd.xlane.f32.xlu2 %v382_v10  ;;  %454 = vadd.xlane.f32.xlu1 %v381_v11  ;;  %v260_v10 = vmul.f32 %v2075_v39, %v2079_v50  ;;  %v259_v11 = vmul.f32 %v2075_v39, %v2081_v49 }
  0xce   :  { %452 = vadd.xlane.f32.xlu0 %v380_v0 }
  0xcf   :  { %v2227_v50 = vsub.f32 %v1918_v16, %v260_v10  ;;  %v2230_v49 = vsub.f32 %v1920_v17, %v259_v11  ;;  %v386_v10 = vmul.f32 %v2233_v8, %v2233_v8  ;;  %v2260_v11 = vsub.f32 %v1916_v15, %v261_v12 }
  0xd0   :  { %v2208_v3 = vpop.xlane.xlu2 %173  ;;  %v2210_v46 = vpop.xlane.xlu1 %171  ;;  %v264_v15 = vmul.f32 %v2075_v39, %v2100_v41 }
  0xd1   :  { %v2212_v56 = vpop.xlane.xlu0 %169  ;;  %v388_v16 = vmul.f32 %v2227_v50, %v2227_v50  ;;  %v387_v17 = vmul.f32 %v2230_v49, %v2230_v49 }
  0xd5   :  { %462 = vadd.xlane.f32.xlu2 %v385_v13  ;;  %460 = vadd.xlane.f32.xlu1 %v384_v14  ;;  %v263_v13 = vmul.f32 %v2075_v39, %v2102_v36  ;;  %v262_v14 = vmul.f32 %v2075_v39, %v2104_v47 }
  0xd6   :  { %458 = vadd.xlane.f32.xlu0 %v383_v7 }
  0xd7   :  { %v2254_v36 = vsub.f32 %v1927_v19, %v263_v13  ;;  %v2257_v47 = vsub.f32 %v1929_v20, %v262_v14  ;;  %v389_v13 = vmul.f32 %v2260_v11, %v2260_v11  ;;  %v2287_v14 = vsub.f32 %v1925_v18, %v264_v15 }
  0xd8   :  { %v2235_v6 = vpop.xlane.xlu2 %179  ;;  %v2237_v0 = vpop.xlane.xlu1 %177  ;;  %v267_v18 = vmul.f32 %v2075_v39, %v2127_v48 }
  0xd9   :  { %v2239_v61 = vpop.xlane.xlu0 %175  ;;  %v391_v19 = vmul.f32 %v2254_v36, %v2254_v36  ;;  %v390_v20 = vmul.f32 %v2257_v47, %v2257_v47 }
  0xdd   :  { %468 = vadd.xlane.f32.xlu2 %v388_v16  ;;  %466 = vadd.xlane.f32.xlu1 %v387_v17  ;;  %v266_v16 = vmul.f32 %v2075_v39, %v2129_v38  ;;  %v265_v17 = vmul.f32 %v2075_v39, %v2131_v57 }
  0xde   :  { %464 = vadd.xlane.f32.xlu0 %v386_v10 }
  0xdf   :  { %v2281_v38 = vsub.f32 %v1936_v22, %v266_v16  ;;  %v2284_v57 = vsub.f32 %v1938_v23, %v265_v17  ;;  %v392_v16 = vmul.f32 %v2287_v14, %v2287_v14  ;;  %v2314_v17 = vsub.f32 %v1934_v21, %v267_v18 }
  0xe0   :  { %v2262_v9 = vpop.xlane.xlu2 %185  ;;  %v2264_v7 = vpop.xlane.xlu1 %183  ;;  %v270_v21 = vmul.f32 %v2075_v39, %v2154_v5 }
  0xe1   :  { %v2266_v42 = vpop.xlane.xlu0 %181  ;;  %v394_v22 = vmul.f32 %v2281_v38, %v2281_v38  ;;  %v393_v23 = vmul.f32 %v2284_v57, %v2284_v57  ;;  %3982 = vst [vmem:[#allocation41_spill] sm:$0xff] %v2314_v17 }
  0xe5   :  { %474 = vadd.xlane.f32.xlu2 %v391_v19  ;;  %472 = vadd.xlane.f32.xlu1 %v390_v20  ;;  %v269_v19 = vmul.f32 %v2075_v39, %v2156_v43  ;;  %v268_v20 = vmul.f32 %v2075_v39, %v2158_v51 }
  0xe6   :  { %470 = vadd.xlane.f32.xlu0 %v389_v13 }
  0xe7   :  { %v2308_v43 = vsub.f32 %v1945_v25, %v269_v19  ;;  %v2311_v51 = vsub.f32 %v1947_v26, %v268_v20  ;;  %v395_v19 = vmul.f32 %v2314_v17, %v2314_v17  ;;  %v2341_v20 = vsub.f32 %v1943_v24, %v270_v21 }
  0xe8   :  { %v2289_v12 = vpop.xlane.xlu2 %191  ;;  %v2291_v10 = vpop.xlane.xlu1 %189  ;;  %v273_v24 = vmul.f32 %v2075_v39, %v2181_v1 }
  0xe9   :  { %v2293_v41 = vpop.xlane.xlu0 %187  ;;  %3981 = vst [vmem:[#allocation40_spill] sm:$0xff] %v2311_v51  ;;  %v397_v25 = vmul.f32 %v2308_v43, %v2308_v43  ;;  %v396_v26 = vmul.f32 %v2311_v51, %v2311_v51 }
  0xea   :  { %3985 = vst [vmem:[#allocation44_spill] sm:$0xff] %v2341_v20 }
  0xed   :  { %480 = vadd.xlane.f32.xlu2 %v394_v22  ;;  %478 = vadd.xlane.f32.xlu1 %v393_v23  ;;  %v272_v22 = vmul.f32 %v2075_v39, %v2183_v40  ;;  %v271_v23 = vmul.f32 %v2075_v39, %v2185_v58 }
  0xee   :  { %476 = vadd.xlane.f32.xlu0 %v392_v16 }
  0xef   :  { %v2335_v40 = vsub.f32 %v1954_v28, %v272_v22  ;;  %v2338_v58 = vsub.f32 %v1956_v29, %v271_v23  ;;  %v398_v22 = vmul.f32 %v2341_v20, %v2341_v20  ;;  %v2368_v23 = vsub.f32 %v1952_v27, %v273_v24 }
  0xf0   :  { %v2316_v15 = vpop.xlane.xlu2 %197  ;;  %v2318_v13 = vpop.xlane.xlu1 %195  ;;  %v276_v27 = vmul.f32 %v2075_v39, %v2208_v3 }
  0xf1   :  { %v2320_v48 = vpop.xlane.xlu0 %193  ;;  %3983 = vst [vmem:[#allocation42_spill] sm:$0xff] %v2335_v40  ;;  %v400_v28 = vmul.f32 %v2335_v40, %v2335_v40  ;;  %v399_v29 = vmul.f32 %v2338_v58, %v2338_v58 }
  0xf2   :  { %3984 = vst [vmem:[#allocation43_spill] sm:$0xff] %v2338_v58 }
  0xf3   :  { %3988 = vst [vmem:[#allocation47_spill] sm:$0xff] %v2368_v23 }
  0xf5   :  { %486 = vadd.xlane.f32.xlu2 %v397_v25  ;;  %484 = vadd.xlane.f32.xlu1 %v396_v26  ;;  %v275_v25 = vmul.f32 %v2075_v39, %v2210_v46  ;;  %v274_v26 = vmul.f32 %v2075_v39, %v2212_v56 }
  0xf6   :  { %482 = vadd.xlane.f32.xlu0 %v395_v19 }
  0xf7   :  { %v2362_v46 = vsub.f32 %v1963_v31, %v275_v25  ;;  %v2365_v56 = vsub.f32 %v1965_v32, %v274_v26  ;;  %v401_v25 = vmul.f32 %v2368_v23, %v2368_v23  ;;  %v2395_v26 = vsub.f32 %v1961_v30, %v276_v27  ;;  %v3995_v27 = vld [vmem:[#allocation11_spill] sm:$0xff] }
  0xf8   :  { %v2343_v18 = vpop.xlane.xlu2 %203  ;;  %v2345_v16 = vpop.xlane.xlu1 %201  ;;  %v279_v30 = vmul.f32 %v2075_v39, %v2235_v6  ;;  %v284_v6 = vmul.f32 %v2075_v39, %v2291_v10 }
  0xf9   :  { %v2347_v5 = vpop.xlane.xlu0 %199  ;;  %3986 = vst [vmem:[#allocation45_spill] sm:$0xff] %v2362_v46  ;;  %v403_v31 = vmul.f32 %v2362_v46, %v2362_v46  ;;  %v402_v32 = vmul.f32 %v2365_v56, %v2365_v56 }
  0xfa   :  { %3987 = vst [vmem:[#allocation46_spill] sm:$0xff] %v2365_v56 }
  0xfb   :  { %3991 = vst [vmem:[#allocation50_spill] sm:$0xff] %v2395_v26 }
  0xfd   :  { %492 = vadd.xlane.f32.xlu2 %v400_v28  ;;  %490 = vadd.xlane.f32.xlu1 %v399_v29  ;;  %v278_v28 = vmul.f32 %v2075_v39, %v2237_v0  ;;  %v277_v29 = vmul.f32 %v2075_v39, %v2239_v61 }
  0xfe   :  { %488 = vadd.xlane.f32.xlu0 %v398_v22 }
  0xff   :  { %v2389_v0 = vsub.f32 %v1972_v34, %v278_v28  ;;  %v2392_v61 = vsub.f32 %v1974_v35, %v277_v29  ;;  %v404_v28 = vmul.f32 %v2395_v26, %v2395_v26  ;;  %v3993_v29 = vld [vmem:[#allocation13_spill] sm:$0xff] }
 0x100   :  { %v2370_v21 = vpop.xlane.xlu2 %209  ;;  %v2372_v19 = vpop.xlane.xlu1 %207 }
 0x101   :  { %v2374_v1 = vpop.xlane.xlu0 %205  ;;  %3989 = vst [vmem:[#allocation48_spill] sm:$0xff] %v2389_v0  ;;  %v406_v34 = vmul.f32 %v2389_v0, %v2389_v0  ;;  %v405_v35 = vmul.f32 %v2392_v61, %v2392_v61 }
 0x102   :  { %3990 = vst [vmem:[#allocation49_spill] sm:$0xff] %v2392_v61 }
 0x105   :  { %498 = vadd.xlane.f32.xlu2 %v403_v31  ;;  %496 = vadd.xlane.f32.xlu1 %v402_v32  ;;  %v281_v31 = vmul.f32 %v2075_v39, %v2264_v7  ;;  %v280_v32 = vmul.f32 %v2075_v39, %v2266_v42 }
 0x106   :  { %494 = vadd.xlane.f32.xlu0 %v401_v25  ;;  %v2422_v25 = vsub.f32 %v3995_v27, %v279_v30  ;;  %v3997_v30 = vld [vmem:[#allocation15_spill] sm:$0xff] }
 0x107   :  { %v2416_v7 = vsub.f32 %v1981_v37, %v281_v31  ;;  %v2419_v42 = vsub.f32 %v3993_v29, %v280_v32  ;;  %v282_v32 = vmul.f32 %v2075_v39, %v2262_v9  ;;  %v2441_v10 = vsub.f32 %v3997_v30, %v284_v6  ;;  %v4001_v29 = vld [vmem:[#allocation12_spill] sm:$0xff]  ;;  %v4003_v30 = vld [vmem:[#allocation18_spill] sm:$0xff] }
 0x108   :  { %v2397_v24 = vpop.xlane.xlu2 %215  ;;  %v2399_v22 = vpop.xlane.xlu1 %213  ;;  %3996 = vst [vmem:[#allocation11_spill] sm:$0xff] %v2422_v25 }
 0x109   :  { %v2401_v3 = vpop.xlane.xlu0 %211  ;;  %3992 = vst [vmem:[#allocation51_spill] sm:$0xff] %v2416_v7  ;;  %v409_v37 = vmul.f32 %v2416_v7, %v2416_v7  ;;  %v408_v31 = vmul.f32 %v2419_v42, %v2419_v42  ;;  %v2447_v27 = vsub.f32 %v4001_v29, %v282_v32  ;;  %v412_v6 = vmul.f32 %v2441_v10, %v2441_v10  ;;  %v4007_v29 = vld [vmem:[#allocation14_spill] sm:$0xff] }
 0x10a   :  { %3994 = vst [vmem:[#allocation13_spill] sm:$0xff] %v2419_v42  ;;  %v285_v32 = vmul.f32 %v2075_v39, %v2289_v12  ;;  %v288_v12 = vmul.f32 %v2075_v39, %v2316_v15 }
 0x10b   :  { %3998 = vst [vmem:[#allocation15_spill] sm:$0xff] %v2441_v10 }
 0x10c   :  { %4002 = vst [vmem:[#allocation12_spill] sm:$0xff] %v2447_v27  ;;  %v2474_v10 = vsub.f32 %v4007_v29, %v285_v32  ;;  %v291_v32 = vmul.f32 %v2075_v39, %v2343_v18  ;;  %v292_v18 = vmul.f32 %v2075_v39, %v2374_v1 }
 0x10d   :  { %504 = vadd.xlane.f32.xlu2 %v406_v34  ;;  %502 = vadd.xlane.f32.xlu1 %v405_v35  ;;  %v283_v34 = vmul.f32 %v2075_v39, %v2293_v41  ;;  %v407_v35 = vmul.f32 %v2422_v25, %v2422_v25 }
 0x10e   :  { %500 = vadd.xlane.f32.xlu0 %v404_v28  ;;  %v3999_v28 = vld [vmem:[#allocation16_spill] sm:$0xff]  ;;  %4008 = vst [vmem:[#allocation14_spill] sm:$0xff] %v2474_v10  ;;  %v413_v15 = vmul.f32 %v2474_v10, %v2474_v10 }
 0x10f   :  { %v2444_v41 = vsub.f32 %v3999_v28, %v283_v34  ;;  %v4005_v28 = vld [vmem:[#allocation19_spill] sm:$0xff]  ;;  %v4015_v10 = vld [vmem:[#allocation20_spill] sm:$0xff] }
 0x110   :  { %v2424_v0 = vpop.xlane.xlu2 %221  ;;  %v220_v61 = vpop.xlane.xlu1 %219 }
 0x111   :  { %v2426_v23 = vpop.xlane.xlu0 %217  ;;  %4000 = vst [vmem:[#allocation16_spill] sm:$0xff] %v2444_v41  ;;  %v411_v34 = vmul.f32 %v2444_v41, %v2444_v41 }
 0x115   :  { %510 = vadd.xlane.f32.xlu2 %v409_v37  ;;  %508 = vadd.xlane.f32.xlu1 %v408_v31  ;;  %v287_v37 = vmul.f32 %v2075_v39, %v2318_v13  ;;  %v286_v31 = vmul.f32 %v2075_v39, %v2320_v48 }
 0x116   :  { %506 = vadd.xlane.f32.xlu0 %v407_v35  ;;  %v410_v35 = vmul.f32 %v2447_v27, %v2447_v27 }
 0x117   :  { %v2468_v13 = vsub.f32 %v4003_v30, %v287_v37  ;;  %v2471_v48 = vsub.f32 %v4005_v28, %v286_v31  ;;  %v4011_v28 = vld [vmem:[#allocation21_spill] sm:$0xff] }
 0x118   :  { %v2449_v7 = vpop.xlane.xlu2 %227  ;;  %v2451_v42 = vpop.xlane.xlu1 %225 }
 0x119   :  { %v2453_v9 = vpop.xlane.xlu0 %223  ;;  %4004 = vst [vmem:[#allocation18_spill] sm:$0xff] %v2468_v13  ;;  %v415_v37 = vmul.f32 %v2468_v13, %v2468_v13  ;;  %v414_v31 = vmul.f32 %v2471_v48, %v2471_v48 }
 0x11a   :  { %4006 = vst [vmem:[#allocation19_spill] sm:$0xff] %v2471_v48  ;;  %v4013_v48 = vld [vmem:[#allocation22_spill] sm:$0xff] }
 0x11d   :  { %516 = vadd.xlane.f32.xlu2 %v412_v6  ;;  %514 = vadd.xlane.f32.xlu1 %v411_v34  ;;  %v290_v6 = vmul.f32 %v2075_v39, %v2345_v16  ;;  %v289_v34 = vmul.f32 %v2075_v39, %v2347_v5  ;;  %v294_v16 = vmul.f32 %v2075_v39, %v2370_v21  ;;  %v4009_v5 = vld [vmem:[#allocation17_spill] sm:$0xff] }
 0x11e   :  { %512 = vadd.xlane.f32.xlu0 %v410_v35  ;;  %v293_v35 = vmul.f32 %v2075_v39, %v2372_v19  ;;  %v2495_v30 = vsub.f32 %v4009_v5, %v288_v12  ;;  %v296_v19 = vmul.f32 %v2075_v39, %v2399_v22  ;;  %v2508_v21 = vsub.f32 %v4015_v10, %v291_v32 }
 0x11f   :  { %v2498_v29 = vsub.f32 %v4011_v28, %v290_v6  ;;  %v2501_v13 = vsub.f32 %v4013_v48, %v289_v34  ;;  %v297_v12 = vmul.f32 %v2075_v39, %v2397_v24  ;;  %v295_v48 = vmul.f32 %v2075_v39, %v2401_v3  ;;  %v4021_v28 = vld [vmem:[#allocation25_spill] sm:$0xff] }
 0x120   :  { %v234_v25 = vpop.xlane.xlu2 %233  ;;  %v232_v41 = vpop.xlane.xlu1 %231  ;;  %4010 = vst [vmem:[#allocation17_spill] sm:$0xff] %v2495_v30  ;;  %v299_v32 = vmul.f32 %v2075_v39, %v220_v61  ;;  %v4025_v61 = vld [vmem:[#allocation26_spill] sm:$0xff] }
 0x121   :  { %v230_v26 = vpop.xlane.xlu0 %229  ;;  %4012 = vst [vmem:[#allocation21_spill] sm:$0xff] %v2498_v29  ;;  %v418_v24 = vmul.f32 %v2498_v29, %v2498_v29  ;;  %v417_v3 = vmul.f32 %v2501_v13, %v2501_v13  ;;  %v2540_v27 = vsub.f32 %v4025_v61, %v297_v12  ;;  %v419_v29 = vmul.f32 %v2508_v21, %v2508_v21  ;;  %v4029_v12 = vld [vmem:[#allocation30_spill] sm:$0xff] }
 0x122   :  { %4014 = vst [vmem:[#allocation22_spill] sm:$0xff] %v2501_v13 }
 0x123   :  { %4016 = vst [vmem:[#allocation20_spill] sm:$0xff] %v2508_v21  ;;  %v4035_v21 = vld [vmem:[#allocation32_spill] sm:$0xff] }
 0x124   :  { %4026 = vst [vmem:[#allocation26_spill] sm:$0xff] %v2540_v27 }
 0x125   :  { %522 = vadd.xlane.f32.xlu2 %v415_v37  ;;  %520 = vadd.xlane.f32.xlu1 %v414_v31  ;;  %v4017_v37 = vld [vmem:[#allocation24_spill] sm:$0xff] }
 0x126   :  { %518 = vadd.xlane.f32.xlu0 %v413_v15  ;;  %v2511_v31 = vsub.f32 %v4017_v37, %v293_v35  ;;  %v4019_v15 = vld [vmem:[#allocation23_spill] sm:$0xff]  ;;  %v416_v35 = vmul.f32 %v2495_v30, %v2495_v30  ;;  %v2530_v37 = vsub.f32 %v4021_v28, %v292_v18  ;;  %v4027_v30 = vld [vmem:[#allocation28_spill] sm:$0xff]  ;;  %v304_v28 = vmul.f32 %v2075_v39, %v230_v26 }
 0x127   :  { %v2518_v5 = vsub.f32 %v4019_v15, %v294_v16  ;;  %v4023_v16 = vld [vmem:[#allocation27_spill] sm:$0xff]  ;;  %v2543_v56 = vsub.f32 %v4027_v30, %v295_v48  ;;  %v2559_v48 = vsub.f32 %v4029_v12, %v299_v32 }
 0x128   :  { %4018 = vst [vmem:[#allocation24_spill] sm:$0xff] %v2511_v31  ;;  %v437_v6 = vpop.xlane.xlu1 %436  ;;  %v439_v34 = vpop.xlane.xlu2 %438  ;;  %v2533_v15 = vsub.f32 %v4023_v16, %v296_v19  ;;  %v421_v18 = vmul.f32 %v2511_v31, %v2511_v31  ;;  %v300_v19 = vmul.f32 %v2075_v39, %v2424_v0  ;;  %v302_v0 = vmul.f32 %v2075_v39, %v2451_v42  ;;  %v4033_v12 = vld [vmem:[#allocation31_spill] sm:$0xff] }
 0x129   :  { %4020 = vst [vmem:[#allocation23_spill] sm:$0xff] %v2518_v5  ;;  %v564_v1 = vmul.f32 %v437_v6, %v2075_v39  ;;  %v565_v22 = vmul.f32 %v439_v34, %v2075_v39  ;;  %v236_v10 = vpop.xlane.xlu0 %235  ;;  %v2556_v30 = vmul.f32 %v2518_v5, %v2518_v5 }
 0x12a   :  { %4022 = vst [vmem:[#allocation25_spill] sm:$0xff] %v2530_v37  ;;  %v2573_v32 = vmul.f32 %v2533_v15, %v2533_v15 }
 0x12b   :  { %4024 = vst [vmem:[#allocation27_spill] sm:$0xff] %v2533_v15  ;;  %v2535_v6 = vadd.f32 1e-06, %v564_v1  ;;  %v2537_v34 = vadd.f32 1e-06, %v565_v22  ;;  %v298_v1 = vmul.f32 %v2075_v39, %v2426_v23  ;;  %v303_v22 = vmul.f32 %v2075_v39, %v2449_v7 }
 0x12c   :  { %4028 = vst [vmem:[#allocation28_spill] sm:$0xff] %v2543_v56  ;;  %v301_v23 = vmul.f32 %v2075_v39, %v2453_v9  ;;  %v305_v7 = vmul.f32 %v2075_v39, %v232_v41  ;;  %v4031_v9 = vld [vmem:[#allocation29_spill] sm:$0xff] }
 0x12d   :  { %1626 = vrsqrt.f32 %v2535_v6  ;;  %528 = vadd.xlane.f32.xlu2 %v418_v24  ;;  %526 = vadd.xlane.f32.xlu1 %v417_v3  ;;  %4030 = vst [vmem:[#allocation30_spill] sm:$0xff] %v2559_v48  ;;  %v306_v24 = vmul.f32 %v2075_v39, %v234_v25  ;;  %v420_v3 = vmul.f32 %v2530_v37, %v2530_v37  ;;  %vm698_vm1 = vweird.f32 %v2535_v6 }
 0x12e   :  { %1628 = vrsqrt.f32 %v2537_v34  ;;  %524 = vadd.xlane.f32.xlu0 %v416_v35  ;;  %v2579_v35 = vmul.f32 %v2543_v56, %v2543_v56  ;;  %v2583_v25 = vmul.f32 %v2540_v27, %v2540_v27  ;;  %v2586_v61 = vsub.f32 %v4031_v9, %v300_v19  ;;  %v4037_v56 = vld [vmem:[#allocation33_spill] sm:$0xff] }
 0x12f   :  { %v2589_v5 = vsub.f32 %v4033_v12, %v298_v1  ;;  %v2594_v37 = vsub.f32 %v4035_v21, %v303_v22  ;;  %v2597_v31 = vsub.f32 %v4037_v56, %v302_v0  ;;  %v2602_v19 = vmul.f32 %v2559_v48, %v2559_v48  ;;  %v4039_v1 = vld [vmem:[#allocation34_spill] sm:$0xff]  ;;  %v4043_v22 = vld [vmem:[#allocation36_spill] sm:$0xff]  ;;  %v4045_v0 = vld [vmem:[#allocation37_spill] sm:$0xff] }
 0x130   :  { %v443_v42 = vpop.xlane.xlu1 %442  ;;  %v445_v16 = vpop.xlane.xlu2 %444  ;;  %4032 = vst [vmem:[#allocation29_spill] sm:$0xff] %v2586_v61  ;;  %v2607_v12 = vsub.f32 %v4039_v1, %v301_v23  ;;  %v2622_v48 = vsub.f32 %v4045_v0, %v304_v28  ;;  %vm708_vm3 = vweird.f32 %v2537_v34 }
 0x131   :  { %4034 = vst [vmem:[#allocation31_spill] sm:$0xff] %v2589_v5  ;;  %v567_v41 = vmul.f32 %v443_v42, %v2075_v39  ;;  %v568_v26 = vmul.f32 %v445_v16, %v2075_v39  ;;  %v441_v15 = vpop.xlane.xlu0 %440  ;;  %v4041_v42 = vld [vmem:[#allocation35_spill] sm:$0xff] }
 0x132   :  { %4036 = vst [vmem:[#allocation32_spill] sm:$0xff] %v2594_v37  ;;  %v566_v27 = vmul.f32 %v441_v15, %v2075_v39  ;;  %v2610_v16 = vsub.f32 %v4041_v42, %v306_v24  ;;  %v2619_v15 = vsub.f32 %v4043_v22, %v305_v7  ;;  %v2634_v7 = vmul.f32 %v2586_v61, %v2586_v61 }
 0x133   :  { %4038 = vst [vmem:[#allocation33_spill] sm:$0xff] %v2597_v31  ;;  %v2604_v9 = vpop.eup %1626  ;;  %v2612_v13 = vadd.f32 1e-06, %v567_v41  ;;  %v2614_v21 = vadd.f32 1e-06, %v568_v26  ;;  %v307_v41 = vmul.f32 %v2075_v39, %v236_v10  ;;  %v2644_v10 = vmul.f32 %v2597_v31, %v2597_v31 }
 0x134   :  { %4040 = vst [vmem:[#allocation34_spill] sm:$0xff] %v2607_v12  ;;  %v2616_v56 = vpop.eup %1628  ;;  %v693_v46 = vmul.f32 %v2604_v9, %v2535_v6  ;;  %v2626_v23 = vadd.f32 1e-06, %v566_v27  ;;  %v2640_v27 = vmul.f32 %v2589_v5, %v2589_v5  ;;  %v2658_v42 = vmul.f32 %v2619_v15, %v2619_v15 }
 0x135   :  { %4042 = vst [vmem:[#allocation35_spill] sm:$0xff] %v2610_v16  ;;  %v703_v24 = vmul.f32 %v2616_v56, %v2537_v34  ;;  %1630 = vrsqrt.f32 %v2612_v13  ;;  %534 = vadd.xlane.f32.xlu2 %v421_v18  ;;  %532 = vadd.xlane.f32.xlu1 %v420_v3  ;;  %v2650_v3 = vmul.f32 %v2607_v12, %v2607_v12  ;;  %vm699_vm2 = vweird.f32 %v2604_v9 }
 0x136   :  { %4044 = vst [vmem:[#allocation36_spill] sm:$0xff] %v2619_v15  ;;  %v694_v28 = vmul.f32 %v2604_v9, %v693_v46  ;;  %1632 = vrsqrt.f32 %v2614_v21  ;;  %530 = vadd.xlane.f32.xlu0 %v419_v29  ;;  %v2654_v46 = vmul.f32 %v2594_v37, %v2594_v37  ;;  %v2662_v22 = vmul.f32 %v2622_v48, %v2622_v48  ;;  %vm700_vm6 = vmor %vm698_vm1, %vm699_vm2 }
 0x137   :  { %4046 = vst [vmem:[#allocation37_spill] sm:$0xff] %v2622_v48  ;;  %v704_v18 = vmul.f32 %v2616_v56, %v703_v24  ;;  %1634 = vrsqrt.f32 %v2626_v23  ;;  %v2666_v0 = vmul.f32 %v2610_v16, %v2610_v16  ;;  %v2669_v61 = vsub.f32 %v2109_v33, %v307_v41 }
 0x138   :  { %v695_v29 = vmul.f32 0.5, %v694_v28  ;;  %v451_v26 = vpop.xlane.xlu2 %450  ;;  %v449_v1 = vpop.xlane.xlu1 %448  ;;  %vm709_vm4 = vweird.f32 %v2616_v56  ;;  %vm728_vm5 = vweird.f32 %v2612_v13  ;;  %vm738_vm8 = vweird.f32 %v2614_v21 }
 0x139   :  { %v705_v24 = vmul.f32 0.5, %v704_v18  ;;  %v571_v28 = vmul.f32 %v451_v26, %v2075_v39  ;;  %v570_v37 = vmul.f32 %v449_v1, %v2075_v39  ;;  %v447_v12 = vpop.xlane.xlu0 %446  ;;  %v2692_v1 = vld [vmem:[#allocation5] ss:$0 sm:$0xff]  ;;  %vm710_vm7 = vmor %vm708_vm3, %vm709_vm4  ;;  %vm718_vm13 = vweird.f32 %v2626_v23 }
 0x13a   :  { %v696_v31 = vsub.f32 1.5, %v695_v29  ;;  %v569_v48 = vmul.f32 %v447_v12, %v2075_v39 }
 0x13b   :  { %v2676_v15 = vpop.eup %1630  ;;  %v706_v16 = vsub.f32 1.5, %v705_v24  ;;  %v2680_v33 = vadd.f32 1e-06, %v571_v28  ;;  %v2688_v26 = vadd.f32 1e-06, %v570_v37 }
 0x13c   :  { %v2682_v41 = vpop.eup %1632  ;;  %v697_v18 = vmul.f32 %v2604_v9, %v696_v31  ;;  %v723_v29 = vmul.f32 %v2676_v15, %v2612_v13  ;;  %v2700_v31 = vadd.f32 1e-06, %v569_v48  ;;  %v2717_v48 = vld [vmem:[%s3882_s2] ss:$0 sm:$0xff]  ;;  %vm729_vm9 = vweird.f32 %v2676_v15 }
 0x13d   :  { %v2690_v12 = vpop.eup %1634  ;;  %v707_v24 = vmul.f32 %v2616_v56, %v706_v16  ;;  %v733_v28 = vmul.f32 %v2682_v41, %v2614_v21  ;;  %1636 = vrsqrt.f32 %v2680_v33  ;;  %540 = vadd.xlane.f32.xlu2 %v2573_v32  ;;  %538 = vadd.xlane.f32.xlu1 %v2579_v35  ;;  %v4047_v32 = vld [vmem:[#allocation38_spill] sm:$0xff]  ;;  %vm739_vm10 = vweird.f32 %v2682_v41  ;;  %vm730_vm12 = vmor %vm728_vm5, %vm729_vm9 }
 0x13e   :  { %v701_v37 = vsel %vm700_vm6, %v2604_v9, %v697_v18  ;;  %v724_v6 = vmul.f32 %v2676_v15, %v723_v29  ;;  %v713_v16 = vmul.f32 %v2690_v12, %v2626_v23  ;;  %536 = vadd.xlane.f32.xlu0 %v2556_v30  ;;  %v4048_v18 = vld [vmem:[#allocation39_spill] sm:$0xff]  ;;  %1638 = vrsqrt.f32 %v2688_v26  ;;  %vm740_vm0 = vmor %vm738_vm8, %vm739_vm10 }
 0x13f   :  { %v1332_v35 = vmul.f32 %v701_v37, %v4047_v32  ;;  %v711_v9 = vsel %vm710_vm7, %v2616_v56, %v707_v24  ;;  %v734_v34 = vmul.f32 %v2682_v41, %v733_v28  ;;  %1640 = vrsqrt.f32 %v2700_v31 }
 0x140   :  { %v1333_v29 = vmul.f32 %v711_v9, %v4048_v18  ;;  %v725_v5 = vmul.f32 0.5, %v724_v6  ;;  %v714_v20 = vmul.f32 %v2690_v12, %v713_v16  ;;  %v457_v30 = vpop.xlane.xlu2 %456  ;;  %v455_v58 = vpop.xlane.xlu1 %454  ;;  %vm719_vm11 = vweird.f32 %v2690_v12 }
 0x141   :  { %v1400_v40 = vmul.f32 %v2692_v1, %v1332_v35  ;;  %v735_v17 = vmul.f32 0.5, %v734_v34  ;;  %v574_v32 = vmul.f32 %v457_v30, %v2075_v39  ;;  %v573_v35 = vmul.f32 %v455_v58, %v2075_v39  ;;  %v453_v9 = vpop.xlane.xlu0 %452  ;;  %vm720_vm1 = vmor %vm718_vm13, %vm719_vm11 }
 0x142   :  { %v1401_v56 = vmul.f32 %v2692_v1, %v1333_v29  ;;  %v726_v24 = vsub.f32 1.5, %v725_v5  ;;  %v715_v28 = vmul.f32 0.5, %v714_v20  ;;  %vm768_vm14 = vweird.f32 %v2680_v33 }
 0x143   :  { %v2731_v37 = vpop.eup %1636  ;;  %v1468_v6 = vadd.f32 %v2717_v48, %v1400_v40  ;;  %v736_v16 = vsub.f32 1.5, %v735_v17  ;;  %v2759_v29 = vadd.f32 1e-06, %v574_v32  ;;  %v572_v32 = vmul.f32 %v453_v9, %v2075_v39 }
 0x144   :  { %v1469_v34 = vadd.f32 %v2717_v48, %v1401_v56  ;;  %v727_v18 = vmul.f32 %v2676_v15, %v726_v24  ;;  %v716_v51 = vsub.f32 1.5, %v715_v28  ;;  %v763_v20 = vmul.f32 %v2731_v37, %v2680_v33  ;;  %v2750_v40 = vpop.eup %1638 }
 0x145   :  { %1532 = vst [vmem:[#allocation7] sm:$0xff] %v1468_v6  ;;  %v737_v17 = vmul.f32 %v2682_v41, %v736_v16  ;;  %vm769_vm15 = vweird.f32 %v2731_v37  ;;  %546 = vadd.xlane.f32.xlu2 %v2602_v19  ;;  %544 = vadd.xlane.f32.xlu1 %v2640_v27  ;;  %v2761_v30 = vpop.eup %1640  ;;  %v753_v21 = vmul.f32 %v2750_v40, %v2688_v26  ;;  %1642 = vrsqrt.f32 %v2759_v29 }
 0x146   :  { %1533 = vst [vmem:[#allocation7 + $0x8] sm:$0xff] %v1469_v34  ;;  %v731_v58 = vsel %vm730_vm12, %v2676_v15, %v727_v18  ;;  %v717_v13 = vmul.f32 %v2690_v12, %v716_v51  ;;  %v764_v5 = vmul.f32 %v2731_v37, %v763_v20  ;;  %v2771_v15 = vadd.f32 1e-06, %v573_v35  ;;  %542 = vadd.xlane.f32.xlu0 %v2583_v25  ;;  %vm770_vm3 = vmor %vm768_vm14, %vm769_vm15 }
 0x147   :  { %v1335_v19 = vmul.f32 %v731_v58, %v2122_v45  ;;  %v741_v27 = vsel %vm740_vm0, %v2682_v41, %v737_v17  ;;  %v743_v45 = vmul.f32 %v2761_v30, %v2700_v31  ;;  %v754_v16 = vmul.f32 %v2750_v40, %v753_v21 }
 0x148   :  { %v1336_v51 = vmul.f32 %v741_v27, %v2119_v63  ;;  %v721_v56 = vsel %vm720_vm1, %v2690_v12, %v717_v13  ;;  %v765_v24 = vmul.f32 0.5, %v764_v5  ;;  %v463_v41 = vpop.xlane.xlu2 %462  ;;  %v461_v28 = vpop.xlane.xlu1 %460  ;;  %vm759_vm2 = vweird.f32 %v2750_v40 }
 0x149   :  { %v1403_v23 = vmul.f32 %v2692_v1, %v1335_v19  ;;  %v1334_v6 = vmul.f32 %v721_v56, %v2125_v52  ;;  %v744_v63 = vmul.f32 %v2761_v30, %v743_v45  ;;  %v755_v18 = vmul.f32 0.5, %v754_v16  ;;  %v459_v5 = vpop.xlane.xlu0 %458 }
 0x14a   :  { %v1404_v25 = vmul.f32 %v2692_v1, %v1336_v51  ;;  %v766_v35 = vsub.f32 1.5, %v765_v24  ;;  %1644 = vrsqrt.f32 %v2771_v15  ;;  %vm749_vm4 = vweird.f32 %v2761_v30 }
 0x14b   :  { %v1471_v12 = vadd.f32 %v2717_v48, %v1403_v23  ;;  %v1402_v34 = vmul.f32 %v2692_v1, %v1334_v6  ;;  %v745_v17 = vmul.f32 0.5, %v744_v63  ;;  %v756_v58 = vsub.f32 1.5, %v755_v18 }
 0x14c   :  { %v1472_v52 = vadd.f32 %v2717_v48, %v1404_v25  ;;  %v767_v20 = vmul.f32 %v2731_v37, %v766_v35  ;;  %v2797_v13 = vadd.f32 1e-06, %v572_v32  ;;  %v577_v21 = vmul.f32 %v463_v41, %v2075_v39 }
 0x14d   :  { %1535 = vst [vmem:[#allocation7 + $0x18] sm:$0xff] %v1471_v12  ;;  %v1470_v9 = vadd.f32 %v2717_v48, %v1402_v34  ;;  %552 = vadd.xlane.f32.xlu2 %v2644_v10  ;;  %550 = vadd.xlane.f32.xlu1 %v2650_v3  ;;  %v746_v27 = vsub.f32 1.5, %v745_v17  ;;  %v576_v51 = vmul.f32 %v461_v28, %v2075_v39  ;;  %vm758_vm5 = vweird.f32 %v2688_v26  ;;  %v2809_v10 = vpop.eup %1642 }
 0x14e   :  { %1536 = vst [vmem:[#allocation7 + $0x20] sm:$0xff] %v1472_v52  ;;  %v771_v19 = vsel %vm770_vm3, %v2731_v37, %v767_v20  ;;  %v757_v56 = vmul.f32 %v2750_v40, %v756_v58  ;;  %1646 = vrsqrt.f32 %v2797_v13  ;;  %548 = vadd.xlane.f32.xlu0 %v2634_v7  ;;  %vm760_vm6 = vmor %vm758_vm5, %vm759_vm2  ;;  %vm748_vm7 = vweird.f32 %v2700_v31 }
 0x14f   :  { %1534 = vst [vmem:[#allocation7 + $0x10] sm:$0xff] %v1470_v9  ;;  %v1339_v33 = vmul.f32 %v771_v19, %v2146_v59  ;;  %v747_v3 = vmul.f32 %v2761_v30, %v746_v27  ;;  %v2815_v37 = vadd.f32 1e-06, %v577_v21  ;;  %v2817_v59 = vadd.f32 1e-06, %v576_v51  ;;  %vm750_vm8 = vmor %vm748_vm7, %vm749_vm4 }
 0x150   :  { %v469_v24 = vpop.xlane.xlu2 %468  ;;  %v761_v45 = vsel %vm760_vm6, %v2750_v40, %v757_v56  ;;  %v793_v7 = vmul.f32 %v2809_v10, %v2759_v29  ;;  %v575_v41 = vmul.f32 %v459_v5, %v2075_v39  ;;  %v467_v28 = vpop.xlane.xlu1 %466  ;;  %v435_v40 = vmul.f32 %v2669_v61, %v2669_v61 }
 0x151   :  { %v1407_v26 = vmul.f32 %v2692_v1, %v1339_v33  ;;  %v2826_v23 = vpop.eup %1644  ;;  %v1338_v31 = vmul.f32 %v761_v45, %v2149_v60  ;;  %v751_v6 = vsel %vm750_vm8, %v2761_v30, %v747_v3  ;;  %1648 = vrsqrt.f32 %v2815_v37  ;;  %v465_v5 = vpop.xlane.xlu0 %464 }
 0x152   :  { %v1337_v32 = vmul.f32 %v751_v6, %v2152_v53  ;;  %v794_v25 = vmul.f32 %v2809_v10, %v793_v7  ;;  %v783_v35 = vmul.f32 %v2826_v23, %v2771_v15  ;;  %vm798_vm9 = vweird.f32 %v2759_v29 }
 0x153   :  { %v1475_v16 = vadd.f32 %v2717_v48, %v1407_v26  ;;  %v1406_v63 = vmul.f32 %v2692_v1, %v1338_v31  ;;  %vm788_vm10 = vweird.f32 %v2771_v15  ;;  %1650 = vrsqrt.f32 %v2817_v59 }
 0x154   :  { %v2842_v60 = vpop.eup %1646  ;;  %v1405_v30 = vmul.f32 %v2692_v1, %v1337_v32  ;;  %v795_v12 = vmul.f32 0.5, %v794_v25  ;;  %v784_v53 = vmul.f32 %v2826_v23, %v783_v35  ;;  %v2846_v34 = vadd.f32 1e-06, %v575_v41 }
 0x155   :  { %1539 = vst [vmem:[#allocation7 + $0x38] sm:$0xff] %v1475_v16  ;;  %558 = vadd.xlane.f32.xlu2 %v2658_v42  ;;  %556 = vadd.xlane.f32.xlu1 %v2662_v22  ;;  %v1474_v18 = vadd.f32 %v2717_v48, %v1406_v63  ;;  %vm799_vm11 = vweird.f32 %v2809_v10  ;;  %v773_v52 = vmul.f32 %v2842_v60, %v2797_v13  ;;  %vm778_vm12 = vweird.f32 %v2797_v13 }
 0x156   :  { %v580_v20 = vmul.f32 %v469_v24, %v2075_v39  ;;  %v1473_v17 = vadd.f32 %v2717_v48, %v1405_v30  ;;  %v796_v9 = vsub.f32 1.5, %v795_v12  ;;  %v785_v58 = vmul.f32 0.5, %v784_v53  ;;  %554 = vadd.xlane.f32.xlu0 %v2654_v46  ;;  %vm800_vm14 = vmor %vm798_vm9, %vm799_vm11 }
 0x157   :  { %1652 = vrsqrt.f32 %v2846_v34  ;;  %v2858_v42 = vpop.eup %1648  ;;  %1538 = vst [vmem:[#allocation7 + $0x30] sm:$0xff] %v1474_v18  ;;  %v774_v22 = vmul.f32 %v2842_v60, %v773_v52  ;;  %v579_v27 = vmul.f32 %v467_v28, %v2075_v39  ;;  %vm789_vm13 = vweird.f32 %v2826_v23 }
 0x158   :  { %v2862_v19 = vadd.f32 1e-06, %v580_v20  ;;  %1537 = vst [vmem:[#allocation7 + $0x28] sm:$0xff] %v1473_v17  ;;  %v797_v21 = vmul.f32 %v2809_v10, %v796_v9  ;;  %v786_v51 = vsub.f32 1.5, %v785_v58  ;;  %v823_v46 = vmul.f32 %v2858_v42, %v2815_v37  ;;  %v2869_v33 = vpop.xlane.xlu2 %474  ;;  %v2887_v29 = vpop.xlane.xlu1 %472  ;;  %vm790_vm1 = vmor %vm788_vm10, %vm789_vm13 }
 0x159   :  { %v2871_v56 = vpop.eup %1650  ;;  %v775_v3 = vmul.f32 0.5, %v774_v22  ;;  %vm828_vm15 = vweird.f32 %v2815_v37  ;;  %v2879_v24 = vadd.f32 1e-06, %v579_v27  ;;  %vm818_vm0 = vweird.f32 %v2817_v59 }
 0x15a   :  { %1654 = vrsqrt.f32 %v2862_v19  ;;  %v801_v26 = vsel %vm800_vm14, %v2809_v10, %v797_v21  ;;  %v787_v45 = vmul.f32 %v2826_v23, %v786_v51  ;;  %v824_v7 = vmul.f32 %v2858_v42, %v823_v46 }
 0x15b   :  { %v813_v41 = vmul.f32 %v2871_v56, %v2817_v59  ;;  %v1342_v28 = vmul.f32 %v801_v26, %v2173_v54  ;;  %v776_v31 = vsub.f32 1.5, %v775_v3  ;;  %vm779_vm2 = vweird.f32 %v2842_v60 }
 0x15c   :  { %1656 = vrsqrt.f32 %v2879_v24  ;;  %v791_v6 = vsel %vm790_vm1, %v2826_v23, %v787_v45  ;;  %v825_v16 = vmul.f32 0.5, %v824_v7  ;;  %vm829_vm3 = vweird.f32 %v2858_v42  ;;  %vm780_vm5 = vmor %vm778_vm12, %vm779_vm2 }
 0x15d   :  { %v2896_v10 = vpop.eup %1652  ;;  %v814_v32 = vmul.f32 %v2871_v56, %v813_v41  ;;  %562 = vadd.xlane.f32.xlu1 %v435_v40  ;;  %v1410_v54 = vmul.f32 %v2692_v1, %v1342_v28  ;;  %v1341_v15 = vmul.f32 %v791_v6, %v2176_v55  ;;  %v777_v25 = vmul.f32 %v2842_v60, %v776_v31  ;;  %vm830_vm8 = vmor %vm828_vm15, %vm829_vm3 }
 0x15e   :  { %v803_v35 = vmul.f32 %v2896_v10, %v2846_v34  ;;  %vm808_vm4 = vweird.f32 %v2846_v34  ;;  %v826_v23 = vsub.f32 1.5, %v825_v16  ;;  %vm819_vm6 = vweird.f32 %v2871_v56  ;;  %560 = vadd.xlane.f32.xlu0 %v2666_v0  ;;  %v471_v0 = vpop.xlane.xlu0 %470 }
 0x15f   :  { %v815_v63 = vmul.f32 0.5, %v814_v32  ;;  %v578_v40 = vmul.f32 %v465_v5, %v2075_v39  ;;  %v1478_v55 = vadd.f32 %v2717_v48, %v1410_v54  ;;  %v1409_v12 = vmul.f32 %v2692_v1, %v1341_v15  ;;  %vm820_vm10 = vmor %vm818_vm0, %vm819_vm6 }
 0x160   :  { %v2912_v30 = vpop.eup %1654  ;;  %v781_v53 = vsel %vm780_vm5, %v2842_v60, %v777_v25  ;;  %v804_v18 = vmul.f32 %v2896_v10, %v803_v35  ;;  %v827_v52 = vmul.f32 %v2858_v42, %v826_v23  ;;  %vm858_vm7 = vweird.f32 %v2862_v19  ;;  %v481_v51 = vpop.xlane.xlu2 %480 }
 0x161   :  { %v1340_v13 = vmul.f32 %v781_v53, %v2179_v2  ;;  %v816_v20 = vsub.f32 1.5, %v815_v63  ;;  %v853_v17 = vmul.f32 %v2912_v30, %v2862_v19  ;;  %1542 = vst [vmem:[#allocation7 + $0x50] sm:$0xff] %v1478_v55  ;;  %v1477_v58 = vadd.f32 %v2717_v48, %v1409_v12  ;;  %v479_v7 = vpop.xlane.xlu1 %478 }
 0x162   :  { %v2923_v9 = vpop.eup %1656  ;;  %v805_v2 = vmul.f32 0.5, %v804_v18  ;;  %vm809_vm9 = vweird.f32 %v2896_v10  ;;  %v2931_v60 = vadd.f32 1e-06, %v578_v40  ;;  %v831_v22 = vsel %vm830_vm8, %v2858_v42, %v827_v52 }
 0x163   :  { %v1408_v5 = vmul.f32 %v2692_v1, %v1340_v13  ;;  %v817_v27 = vmul.f32 %v2871_v56, %v816_v20  ;;  %v854_v21 = vmul.f32 %v2912_v30, %v853_v17  ;;  %1541 = vst [vmem:[#allocation7 + $0x48] sm:$0xff] %v1477_v58  ;;  %v1345_v46 = vmul.f32 %v831_v22, %v2200_v62  ;;  %vm810_vm12 = vmor %vm808_vm4, %vm809_vm9 }
 0x164   :  { %v806_v37 = vsub.f32 1.5, %v805_v2  ;;  %vm859_vm11 = vweird.f32 %v2912_v30  ;;  %v843_v3 = vmul.f32 %v2923_v9, %v2879_v24  ;;  %1658 = vrsqrt.f32 %v2931_v60 }
 0x165   :  { %v1476_v42 = vadd.f32 %v2717_v48, %v1408_v5  ;;  %v821_v26 = vsel %vm820_vm10, %v2871_v56, %v817_v27  ;;  %v855_v45 = vmul.f32 0.5, %v854_v21  ;;  %v1413_v62 = vmul.f32 %v2692_v1, %v1345_v46  ;;  %vm860_vm14 = vmor %vm858_vm7, %vm859_vm11 }
 0x166   :  { %v1344_v41 = vmul.f32 %v821_v26, %v2203_v44  ;;  %v807_v59 = vmul.f32 %v2896_v10, %v806_v37  ;;  %v844_v28 = vmul.f32 %v2923_v9, %v843_v3  ;;  %vm849_vm13 = vweird.f32 %v2923_v9  ;;  %v477_v55 = vpop.xlane.xlu0 %476 }
 0x167   :  { %1540 = vst [vmem:[#allocation7 + $0x40] sm:$0xff] %v1476_v42  ;;  %v856_v31 = vsub.f32 1.5, %v855_v45  ;;  %v583_v56 = vmul.f32 %v2869_v33, %v2075_v39  ;;  %v582_v6 = vmul.f32 %v2887_v29, %v2075_v39  ;;  %v1481_v44 = vadd.f32 %v2717_v48, %v1413_v62 }
 0x168   :  { %v1412_v16 = vmul.f32 %v2692_v1, %v1344_v41  ;;  %v811_v32 = vsel %vm810_vm12, %v2896_v10, %v807_v59  ;;  %v845_v54 = vmul.f32 0.5, %v844_v28  ;;  %v581_v10 = vmul.f32 %v471_v0, %v2075_v39  ;;  %v487_v13 = vpop.xlane.xlu2 %486 }
 0x169   :  { %v1343_v15 = vmul.f32 %v811_v32, %v2206_v4  ;;  %v857_v34 = vmul.f32 %v2912_v30, %v856_v31  ;;  %v2966_v25 = vadd.f32 1e-06, %v583_v56  ;;  %v2968_v35 = vadd.f32 1e-06, %v582_v6  ;;  %1545 = vst [vmem:[#allocation7 + $0x68] sm:$0xff] %v1481_v44  ;;  %v485_v58 = vpop.xlane.xlu1 %484 }
 0x16a   :  { %v1480_v33 = vadd.f32 %v2717_v48, %v1412_v16  ;;  %v846_v29 = vsub.f32 1.5, %v845_v54  ;;  %v586_v23 = vmul.f32 %v481_v51, %v2075_v39  ;;  %v1659_v4 = vpop.eup %1658  ;;  %vm848_vm15 = vweird.f32 %v2879_v24 }
 0x16b   :  { %v1411_v63 = vmul.f32 %v2692_v1, %v1343_v15  ;;  %v861_v40 = vsel %vm860_vm14, %v2912_v30, %v857_v34  ;;  %1660 = vrsqrt.f32 %v2966_v25  ;;  %v833_v19 = vmul.f32 %v1659_v4, %v2931_v60  ;;  %vm850_vm0 = vmor %vm848_vm15, %vm849_vm13 }
 0x16c   :  { %1544 = vst [vmem:[#allocation7 + $0x60] sm:$0xff] %v1480_v33  ;;  %v1348_v12 = vmul.f32 %v861_v40, %v2227_v50  ;;  %v847_v53 = vmul.f32 %v2923_v9, %v846_v29  ;;  %1662 = vrsqrt.f32 %v2968_v35  ;;  %v2988_v30 = vadd.f32 1e-06, %v581_v10 }
 0x16d   :  { %v1479_v18 = vadd.f32 %v2717_v48, %v1411_v63  ;;  %v834_v20 = vmul.f32 %v1659_v4, %v833_v19  ;;  %v2992_v17 = vadd.f32 1e-06, %v586_v23  ;;  %v585_v0 = vmul.f32 %v479_v7, %v2075_v39 }
 0x16e   :  { %v1416_v52 = vmul.f32 %v2692_v1, %v1348_v12  ;;  %v851_v50 = vsel %vm850_vm0, %v2923_v9, %v847_v53  ;;  %1664 = vrsqrt.f32 %v2988_v30  ;;  %v584_v21 = vmul.f32 %v477_v55, %v2075_v39  ;;  %v483_v28 = vpop.xlane.xlu0 %482 }
 0x16f   :  { %1543 = vst [vmem:[#allocation7 + $0x58] sm:$0xff] %v1479_v18  ;;  %v1347_v24 = vmul.f32 %v851_v50, %v2230_v49  ;;  %v835_v5 = vmul.f32 0.5, %v834_v20  ;;  %1666 = vrsqrt.f32 %v2992_v17  ;;  %v3002_v27 = vadd.f32 1e-06, %v585_v0 }
 0x170   :  { %v1484_v2 = vadd.f32 %v2717_v48, %v1416_v52  ;;  %v589_v49 = vmul.f32 %v487_v13, %v2075_v39  ;;  %vm839_vm1 = vweird.f32 %v1659_v4  ;;  %v588_v37 = vmul.f32 %v485_v58, %v2075_v39  ;;  %v3039_v15 = vpop.xlane.xlu2 %492 }
 0x171   :  { %v2999_v22 = vpop.eup %1660  ;;  %v1415_v9 = vmul.f32 %v2692_v1, %v1347_v24  ;;  %v836_v51 = vsub.f32 1.5, %v835_v5  ;;  %vm838_vm2 = vweird.f32 %v2931_v60  ;;  %1668 = vrsqrt.f32 %v3002_v27  ;;  %v3065_v20 = vpop.xlane.xlu1 %490 }
 0x172   :  { %1548 = vst [vmem:[#allocation7 + $0x80] sm:$0xff] %v1484_v2  ;;  %v883_v46 = vmul.f32 %v2999_v22, %v2966_v25  ;;  %v3009_v3 = vpop.eup %1662  ;;  %v3014_v26 = vadd.f32 1e-06, %v584_v21  ;;  %vm888_vm3 = vweird.f32 %v2966_v25  ;;  %vm840_vm4 = vmor %vm838_vm2, %vm839_vm1  ;;  %vm878_vm5 = vweird.f32 %v2968_v35 }
 0x173   :  { %v1483_v42 = vadd.f32 %v2717_v48, %v1415_v9  ;;  %v837_v45 = vmul.f32 %v1659_v4, %v836_v51  ;;  %v873_v62 = vmul.f32 %v3009_v3, %v2968_v35  ;;  %v3024_v60 = vadd.f32 1e-06, %v589_v49 }
 0x174   :  { %v884_v7 = vmul.f32 %v2999_v22, %v883_v46  ;;  %v3020_v41 = vpop.eup %1664  ;;  %1670 = vrsqrt.f32 %v3014_v26  ;;  %v3026_v59 = vadd.f32 1e-06, %v588_v37  ;;  %vm868_vm6 = vweird.f32 %v2988_v30 }
 0x175   :  { %1547 = vst [vmem:[#allocation7 + $0x78] sm:$0xff] %v1483_v42  ;;  %v3028_v31 = vpop.eup %1666  ;;  %v841_v56 = vsel %vm840_vm4, %v1659_v4, %v837_v45  ;;  %v874_v44 = vmul.f32 %v3009_v3, %v873_v62  ;;  %v863_v16 = vmul.f32 %v3020_v41, %v2988_v30  ;;  %vm889_vm7 = vweird.f32 %v2999_v22 }
 0x176   :  { %v885_v6 = vmul.f32 0.5, %v884_v7  ;;  %v1346_v32 = vmul.f32 %v841_v56, %v2233_v8  ;;  %v913_v54 = vmul.f32 %v3028_v31, %v2992_v17  ;;  %vm918_vm8 = vweird.f32 %v2992_v17  ;;  %vm890_vm11 = vmor %vm888_vm3, %vm889_vm7  ;;  %v489_v51 = vpop.xlane.xlu0 %488 }
 0x177   :  { %v875_v33 = vmul.f32 0.5, %v874_v44  ;;  %v864_v29 = vmul.f32 %v3020_v41, %v863_v16  ;;  %1672 = vrsqrt.f32 %v3024_v60  ;;  %v3043_v10 = vpop.eup %1668  ;;  %vm879_vm9 = vweird.f32 %v3009_v3 }
 0x178   :  { %v886_v34 = vsub.f32 1.5, %v885_v6  ;;  %v1414_v23 = vmul.f32 %v2692_v1, %v1346_v32  ;;  %v914_v8 = vmul.f32 %v3028_v31, %v913_v54  ;;  %1674 = vrsqrt.f32 %v3026_v59  ;;  %vm880_vm14 = vmor %vm878_vm5, %vm879_vm9  ;;  %v499_v62 = vpop.xlane.xlu2 %498 }
 0x179   :  { %v876_v63 = vsub.f32 1.5, %v875_v33  ;;  %v865_v40 = vmul.f32 0.5, %v864_v29  ;;  %v903_v55 = vmul.f32 %v3043_v10, %v3002_v27  ;;  %vm908_vm10 = vweird.f32 %v3002_v27 }
 0x17a   :  { %v887_v4 = vmul.f32 %v2999_v22, %v886_v34  ;;  %v3053_v12 = vpop.eup %1670  ;;  %v1482_v53 = vadd.f32 %v2717_v48, %v1414_v23  ;;  %vm869_vm12 = vweird.f32 %v3020_v41  ;;  %v915_v19 = vmul.f32 0.5, %v914_v8 }
 0x17b   :  { %vm919_vm13 = vweird.f32 %v3028_v31  ;;  %v877_v13 = vmul.f32 %v3009_v3, %v876_v63  ;;  %v866_v52 = vsub.f32 1.5, %v865_v40  ;;  %v904_v50 = vmul.f32 %v3043_v10, %v903_v55  ;;  %vm870_vm2 = vmor %vm868_vm6, %vm869_vm12 }
 0x17c   :  { %v891_v18 = vsel %vm890_vm11, %v2999_v22, %v887_v4  ;;  %1546 = vst [vmem:[#allocation7 + $0x70] sm:$0xff] %v1482_v53  ;;  %v916_v25 = vsub.f32 1.5, %v915_v19  ;;  %vm909_vm15 = vweird.f32 %v3043_v10  ;;  %v893_v0 = vmul.f32 %v3053_v12, %v3014_v26  ;;  %vm920_vm3 = vmor %vm918_vm8, %vm919_vm13 }
 0x17d   :  { %v1351_v24 = vmul.f32 %v891_v18, %v2254_v36  ;;  %v3075_v58 = vpop.eup %1672  ;;  %v881_v2 = vsel %vm880_vm14, %v3009_v3, %v877_v13  ;;  %v867_v5 = vmul.f32 %v3020_v41, %v866_v52  ;;  %v905_v22 = vmul.f32 0.5, %v904_v50  ;;  %vm910_vm5 = vmor %vm908_vm10, %vm909_vm15 }
 0x17e   :  { %vm898_vm0 = vweird.f32 %v3014_v26  ;;  %vm899_vm1 = vweird.f32 %v3053_v12  ;;  %v3081_v36 = vpop.eup %1674  ;;  %v1350_v9 = vmul.f32 %v881_v2, %v2257_v47  ;;  %v917_v21 = vmul.f32 %v3028_v31, %v916_v25 }
 0x17f   :  { %v1419_v35 = vmul.f32 %v2692_v1, %v1351_v24  ;;  %v894_v49 = vmul.f32 %v3053_v12, %v893_v0  ;;  %v871_v46 = vsel %vm870_vm2, %v3020_v41, %v867_v5  ;;  %v906_v37 = vsub.f32 1.5, %v905_v22  ;;  %vm900_vm7 = vmor %vm898_vm0, %vm899_vm1  ;;  %v4049_v22 = vld [vmem:[#allocation40_spill] sm:$0xff] }
 0x180   :  { %v943_v47 = vmul.f32 %v3075_v58, %v3024_v60  ;;  %vm948_vm4 = vweird.f32 %v3024_v60  ;;  %v587_v30 = vmul.f32 %v483_v28, %v2075_v39  ;;  %v1418_v42 = vmul.f32 %v2692_v1, %v1350_v9  ;;  %v505_v25 = vpop.xlane.xlu2 %504 }
 0x181   :  { %v1487_v3 = vadd.f32 %v2717_v48, %v1419_v35  ;;  %v1349_v45 = vmul.f32 %v871_v46, %v2260_v11  ;;  %v921_v7 = vsel %vm920_vm3, %v3028_v31, %v917_v21  ;;  %v907_v41 = vmul.f32 %v3043_v10, %v906_v37 }
 0x182   :  { %v1354_v17 = vmul.f32 %v921_v7, %v2281_v38  ;;  %v895_v56 = vmul.f32 0.5, %v894_v49  ;;  %v944_v6 = vmul.f32 %v3075_v58, %v943_v47  ;;  %v1486_v44 = vadd.f32 %v2717_v48, %v1418_v42 }
 0x183   :  { %1551 = vst [vmem:[#allocation7 + $0x98] sm:$0xff] %v1487_v3  ;;  %v1417_v28 = vmul.f32 %v2692_v1, %v1349_v45  ;;  %vm949_vm6 = vweird.f32 %v3075_v58  ;;  %v933_v11 = vmul.f32 %v3081_v36, %v3026_v59  ;;  %v911_v31 = vsel %vm910_vm5, %v3043_v10, %v907_v41  ;;  %v497_v10 = vpop.xlane.xlu1 %496 }
 0x184   :  { %v1422_v38 = vmul.f32 %v2692_v1, %v1354_v17  ;;  %v896_v16 = vsub.f32 1.5, %v895_v56  ;;  %v945_v32 = vmul.f32 0.5, %v944_v6  ;;  %1550 = vst [vmem:[#allocation7 + $0x90] sm:$0xff] %v1486_v44  ;;  %v1353_v34 = vmul.f32 %v911_v31, %v2284_v57  ;;  %vm950_vm9 = vmor %vm948_vm4, %vm949_vm6 }
 0x185   :  { %v1485_v54 = vadd.f32 %v2717_v48, %v1417_v28  ;;  %v934_v33 = vmul.f32 %v3081_v36, %v933_v11  ;;  %v3121_v27 = vadd.f32 1e-06, %v587_v30  ;;  %v592_v4 = vmul.f32 %v3039_v15, %v2075_v39 }
 0x186   :  { %v1490_v29 = vadd.f32 %v2717_v48, %v1422_v38  ;;  %v897_v23 = vmul.f32 %v3053_v12, %v896_v16  ;;  %v946_v8 = vsub.f32 1.5, %v945_v32  ;;  %v1421_v63 = vmul.f32 %v2692_v1, %v1353_v34 }
 0x187   :  { %1549 = vst [vmem:[#allocation7 + $0x88] sm:$0xff] %v1485_v54  ;;  %v935_v57 = vmul.f32 0.5, %v934_v33  ;;  %vm939_vm8 = vweird.f32 %v3081_v36  ;;  %1676 = vrsqrt.f32 %v3121_v27  ;;  %v3136_v15 = vadd.f32 1e-06, %v592_v4 }
 0x188   :  { %1554 = vst [vmem:[#allocation7 + $0xb0] sm:$0xff] %v1490_v29  ;;  %v901_v40 = vsel %vm900_vm7, %v3053_v12, %v897_v23  ;;  %v947_v55 = vmul.f32 %v3075_v58, %v946_v8  ;;  %v591_v53 = vmul.f32 %v3065_v20, %v2075_v39  ;;  %v1489_v19 = vadd.f32 %v2717_v48, %v1421_v63  ;;  %v495_v12 = vpop.xlane.xlu0 %494  ;;  %v3204_v54 = vpop.xlane.xlu2 %510 }
 0x189   :  { %v1352_v26 = vmul.f32 %v901_v40, %v2287_v14  ;;  %v936_v18 = vsub.f32 1.5, %v935_v57  ;;  %v590_v13 = vmul.f32 %v489_v51, %v2075_v39  ;;  %vm938_vm10 = vweird.f32 %v3026_v59 }
 0x18a   :  { %v951_v52 = vsel %vm950_vm9, %v3075_v58, %v947_v55  ;;  %1678 = vrsqrt.f32 %v3136_v15  ;;  %v3150_v50 = vadd.f32 1e-06, %v591_v53  ;;  %1553 = vst [vmem:[#allocation7 + $0xa8] sm:$0xff] %v1489_v19  ;;  %vm940_vm11 = vmor %vm938_vm10, %vm939_vm8  ;;  %v595_v59 = vmul.f32 %v499_v62, %v2075_v39 }
 0x18b   :  { %v1420_v14 = vmul.f32 %v2692_v1, %v1352_v26  ;;  %v1357_v20 = vmul.f32 %v951_v52, %v2308_v43  ;;  %v937_v60 = vmul.f32 %v3081_v36, %v936_v18  ;;  %v3155_v24 = vadd.f32 1e-06, %v590_v13  ;;  %v503_v3 = vpop.xlane.xlu1 %502 }
 0x18c   :  { %1680 = vrsqrt.f32 %v3150_v50  ;;  %v594_v0 = vmul.f32 %v497_v10, %v2075_v39  ;;  %v3169_v49 = vadd.f32 1e-06, %v595_v59  ;;  %v593_v46 = vmul.f32 %v495_v12, %v2075_v39 }
 0x18d   :  { %v1677_v58 = vpop.eup %1676  ;;  %v1488_v2 = vadd.f32 %v2717_v48, %v1420_v14  ;;  %v1425_v5 = vmul.f32 %v2692_v1, %v1357_v20  ;;  %v941_v43 = vsel %vm940_vm11, %v3081_v36, %v937_v60  ;;  %1682 = vrsqrt.f32 %v3155_v24 }
 0x18e   :  { %v1356_v35 = vmul.f32 %v941_v43, %v4049_v22  ;;  %v923_v9 = vmul.f32 %v1677_v58, %v3121_v27  ;;  %v3171_v51 = vadd.f32 1e-06, %v594_v0  ;;  %v598_v30 = vmul.f32 %v505_v25, %v2075_v39  ;;  %v4051_v0 = vld [vmem:[#allocation42_spill] sm:$0xff] }
 0x18f   :  { %1552 = vst [vmem:[#allocation7 + $0xa0] sm:$0xff] %v1488_v2  ;;  %v1493_v21 = vadd.f32 %v2717_v48, %v1425_v5  ;;  %vm928_vm12 = vweird.f32 %v3121_v27  ;;  %vm978_vm13 = vweird.f32 %v3136_v15  ;;  %1684 = vrsqrt.f32 %v3169_v49  ;;  %v4050_v27 = vld [vmem:[#allocation41_spill] sm:$0xff] }
 0x190   :  { %v3174_v37 = vpop.eup %1678  ;;  %v1424_v47 = vmul.f32 %v2692_v1, %v1356_v35  ;;  %v924_v36 = vmul.f32 %v1677_v58, %v923_v9  ;;  %vm929_vm14 = vweird.f32 %v1677_v58  ;;  %1686 = vrsqrt.f32 %v3171_v51  ;;  %v501_v28 = vpop.xlane.xlu0 %500  ;;  %v3265_v9 = vld [vmem:[#allocation5] ss:$0 sm:$0xff] }
 0x191   :  { %1557 = vst [vmem:[#allocation7 + $0xc8] sm:$0xff] %v1493_v21  ;;  %v973_v42 = vmul.f32 %v3174_v37, %v3136_v15  ;;  %vm968_vm15 = vweird.f32 %v3150_v50  ;;  %v3193_v6 = vadd.f32 1e-06, %v593_v46  ;;  %v597_v44 = vmul.f32 %v503_v3, %v2075_v39  ;;  %vm930_vm3 = vmor %vm928_vm12, %vm929_vm14  ;;  %v4052_v46 = vld [vmem:[#allocation43_spill] sm:$0xff] }
 0x192   :  { %v3183_v45 = vpop.eup %1680  ;;  %v1492_v7 = vadd.f32 %v2717_v48, %v1424_v47  ;;  %v925_v62 = vmul.f32 0.5, %v924_v36  ;;  %vm958_vm0 = vweird.f32 %v3155_v24  ;;  %v3199_v31 = vadd.f32 1e-06, %v598_v30  ;;  %v4053_v36 = vld [vmem:[#allocation44_spill] sm:$0xff] }
 0x193   :  { %v3187_v17 = vpop.eup %1682  ;;  %v974_v41 = vmul.f32 %v3174_v37, %v973_v42  ;;  %v963_v56 = vmul.f32 %v3183_v45, %v3150_v50  ;;  %vm979_vm1 = vweird.f32 %v3174_v37  ;;  %1688 = vrsqrt.f32 %v3193_v6  ;;  %v3237_v52 = vpop.xlane.xlu1 %508 }
 0x194   :  { %1556 = vst [vmem:[#allocation7 + $0xc0] sm:$0xff] %v1492_v7  ;;  %v926_v11 = vsub.f32 1.5, %v925_v62  ;;  %v953_v38 = vmul.f32 %v3187_v17, %v3155_v24  ;;  %vm969_vm2 = vweird.f32 %v3183_v45  ;;  %1690 = vrsqrt.f32 %v3199_v31  ;;  %vm980_vm7 = vmor %vm978_vm13, %vm979_vm1  ;;  %v3279_v62 = vld [vmem:[%s3882_s2] ss:$0 sm:$0xff] }
 0x195   :  { %v975_v16 = vmul.f32 0.5, %v974_v41  ;;  %v964_v32 = vmul.f32 %v3183_v45, %v963_v56  ;;  %v3209_v29 = vpop.eup %1684  ;;  %vm959_vm4 = vweird.f32 %v3187_v17  ;;  %v3215_v4 = vadd.f32 1e-06, %v597_v44  ;;  %vm970_vm9 = vmor %vm968_vm15, %vm969_vm2 }
 0x196   :  { %v927_v34 = vmul.f32 %v1677_v58, %v926_v11  ;;  %v954_v33 = vmul.f32 %v3187_v17, %v953_v38  ;;  %v3217_v10 = vpop.eup %1686  ;;  %v1003_v40 = vmul.f32 %v3209_v29, %v3169_v49  ;;  %vm1008_vm5 = vweird.f32 %v3169_v49  ;;  %vm960_vm10 = vmor %vm958_vm0, %vm959_vm4 }
 0x197   :  { %v976_v23 = vsub.f32 1.5, %v975_v16  ;;  %v965_v8 = vmul.f32 0.5, %v964_v32  ;;  %v3223_v55 = vmul.f32 %v501_v28, %v2075_v39  ;;  %v993_v18 = vmul.f32 %v3217_v10, %v3171_v51 }
 0x198   :  { %v931_v63 = vsel %vm930_vm3, %v1677_v58, %v927_v34  ;;  %v955_v57 = vmul.f32 0.5, %v954_v33  ;;  %vm998_vm6 = vweird.f32 %v3171_v51  ;;  %v1004_v12 = vmul.f32 %v3209_v29, %v1003_v40  ;;  %v3263_v50 = vpop.xlane.xlu0 %506  ;;  %v4054_v33 = vld [vmem:[#allocation45_spill] sm:$0xff] }
 0x199   :  { %v1355_v53 = vmul.f32 %v931_v63, %v4050_v27  ;;  %v977_v19 = vmul.f32 %v3174_v37, %v976_v23  ;;  %v966_v26 = vsub.f32 1.5, %v965_v8  ;;  %vm1009_vm8 = vweird.f32 %v3209_v29  ;;  %v3239_v14 = vpop.eup %1688 }
 0x19a   :  { %v956_v13 = vsub.f32 1.5, %v955_v57  ;;  %1692 = vrsqrt.f32 %v3215_v4  ;;  %v994_v15 = vmul.f32 %v3217_v10, %v993_v18  ;;  %v3245_v59 = vpop.eup %1690  ;;  %v1005_v5 = vmul.f32 0.5, %v1004_v12  ;;  %vm1010_vm15 = vmor %vm1008_vm5, %vm1009_vm8  ;;  %v4055_v57 = vld [vmem:[#allocation46_spill] sm:$0xff] }
 0x19b   :  { %v1423_v20 = vmul.f32 %v2692_v1, %v1355_v53  ;;  %v981_v60 = vsel %vm980_vm7, %v3174_v37, %v977_v19  ;;  %v967_v25 = vmul.f32 %v3183_v45, %v966_v26  ;;  %v983_v1 = vmul.f32 %v3239_v14, %v3193_v6  ;;  %v515_v51 = vpop.xlane.xlu1 %514 }
 0x19c   :  { %v1360_v58 = vmul.f32 %v981_v60, %v4051_v0  ;;  %v957_v2 = vmul.f32 %v3187_v17, %v956_v13  ;;  %v995_v35 = vmul.f32 0.5, %v994_v15  ;;  %vm999_vm11 = vweird.f32 %v3217_v10  ;;  %v4056_v15 = vld [vmem:[#allocation47_spill] sm:$0xff] }
 0x19d   :  { %v1491_v43 = vadd.f32 %v2717_v48, %v1423_v20  ;;  %v971_v22 = vsel %vm970_vm9, %v3183_v45, %v967_v25  ;;  %vm988_vm12 = vweird.f32 %v3193_v6  ;;  %v1006_v47 = vsub.f32 1.5, %v1005_v5  ;;  %v517_v45 = vpop.xlane.xlu2 %516  ;;  %vm1000_vm0 = vmor %vm998_vm6, %vm999_vm11 }
 0x19e   :  { %v1428_v21 = vmul.f32 %v3265_v9, %v1360_v58  ;;  %v1359_v48 = vmul.f32 %v971_v22, %v4052_v46  ;;  %v961_v37 = vsel %vm960_vm10, %v3187_v17, %v957_v2  ;;  %v996_v30 = vsub.f32 1.5, %v995_v35 }
 0x19f   :  { %1555 = vst [vmem:[#allocation7 + $0xb8] sm:$0xff] %v1491_v43  ;;  %v1358_v24 = vmul.f32 %v961_v37, %v4053_v36  ;;  %v984_v3 = vmul.f32 %v3239_v14, %v983_v1  ;;  %v1033_v42 = vmul.f32 %v3245_v59, %v3199_v31  ;;  %v1007_v56 = vmul.f32 %v3209_v29, %v1006_v47  ;;  %v4058_v36 = vld [vmem:[#allocation49_spill] sm:$0xff] }
 0x1a0   :  { %v3274_v7 = vpop.eup %1692  ;;  %v1496_v17 = vadd.f32 %v3279_v62, %v1428_v21  ;;  %v1427_v41 = vmul.f32 %v3265_v9, %v1359_v48  ;;  %vm989_vm13 = vweird.f32 %v3239_v14  ;;  %vm1038_vm14 = vweird.f32 %v3199_v31  ;;  %v4057_v21 = vld [vmem:[#allocation48_spill] sm:$0xff] }
 0x1a1   :  { %v1426_v44 = vmul.f32 %v3265_v9, %v1358_v24  ;;  %v997_v28 = vmul.f32 %v3217_v10, %v996_v30  ;;  %v985_v11 = vmul.f32 0.5, %v984_v3  ;;  %v1034_v38 = vmul.f32 %v3245_v59, %v1033_v42  ;;  %vm990_vm3 = vmor %vm988_vm12, %vm989_vm13 }
 0x1a2   :  { %1560 = vst [vmem:[#allocation7 + $0xe0] sm:$0xff] %v1496_v17  ;;  %v1495_v16 = vadd.f32 %v3279_v62, %v1427_v41  ;;  %v1011_v32 = vsel %vm1010_vm15, %v3209_v29, %v1007_v56  ;;  %vm1039_vm1 = vweird.f32 %v3245_v59  ;;  %v1023_v49 = vmul.f32 %v3274_v7, %v3215_v4 }
 0x1a3   :  { %v1494_v34 = vadd.f32 %v3279_v62, %v1426_v44  ;;  %v1363_v23 = vmul.f32 %v1011_v32, %v4054_v33  ;;  %v1001_v8 = vsel %vm1000_vm0, %v3217_v10, %v997_v28  ;;  %v986_v63 = vsub.f32 1.5, %v985_v11  ;;  %vm1040_vm5 = vmor %vm1038_vm14, %vm1039_vm1  ;;  %v521_v42 = vpop.xlane.xlu1 %520 }
 0x1a4   :  { %1559 = vst [vmem:[#allocation7 + $0xd8] sm:$0xff] %v1495_v16  ;;  %v1362_v29 = vmul.f32 %v1001_v8, %v4055_v57  ;;  %v1035_v40 = vmul.f32 0.5, %v1034_v38  ;;  %v1024_v27 = vmul.f32 %v3274_v7, %v1023_v49  ;;  %vm1028_vm2 = vweird.f32 %v3215_v4 }
 0x1a5   :  { %1558 = vst [vmem:[#allocation7 + $0xd0] sm:$0xff] %v1494_v34  ;;  %v1431_v53 = vmul.f32 %v3265_v9, %v1363_v23  ;;  %v987_v19 = vmul.f32 %v3239_v14, %v986_v63  ;;  %v3311_v26 = vadd.f32 1e-06, %v3223_v55  ;;  %v601_v10 = vmul.f32 %v3204_v54, %v2075_v39  ;;  %v513_v54 = vpop.xlane.xlu0 %512  ;;  %v523_v1 = vpop.xlane.xlu2 %522 }
 0x1a6   :  { %v1430_v18 = vmul.f32 %v3265_v9, %v1362_v29  ;;  %v1036_v13 = vsub.f32 1.5, %v1035_v40  ;;  %v1025_v12 = vmul.f32 0.5, %v1024_v27  ;;  %v600_v20 = vmul.f32 %v3237_v52, %v2075_v39 }
 0x1a7   :  { %v1499_v60 = vadd.f32 %v3279_v62, %v1431_v53  ;;  %v991_v55 = vsel %vm990_vm3, %v3239_v14, %v987_v19  ;;  %vm1029_vm4 = vweird.f32 %v3274_v7  ;;  %1694 = vrsqrt.f32 %v3311_v26 }
 0x1a8   :  { %v1498_v25 = vadd.f32 %v3279_v62, %v1430_v18  ;;  %v1361_v0 = vmul.f32 %v991_v55, %v4056_v15  ;;  %v1037_v6 = vmul.f32 %v3245_v59, %v1036_v13  ;;  %v1026_v58 = vsub.f32 1.5, %v1025_v12  ;;  %vm1030_vm6 = vmor %vm1028_vm2, %vm1029_vm4 }
 0x1a9   :  { %1563 = vst [vmem:[#allocation7 + $0xf8] sm:$0xff] %v1499_v60  ;;  %v3333_v52 = vadd.f32 1e-06, %v601_v10  ;;  %v3335_v14 = vadd.f32 1e-06, %v600_v20  ;;  %v599_v2 = vmul.f32 %v3263_v50, %v2075_v39  ;;  %v604_v5 = vmul.f32 %v517_v45, %v2075_v39 }
 0x1aa   :  { %1562 = vst [vmem:[#allocation7 + $0xf0] sm:$0xff] %v1498_v25  ;;  %v1429_v43 = vmul.f32 %v3265_v9, %v1361_v0  ;;  %v1041_v22 = vsel %vm1040_vm5, %v3245_v59, %v1037_v6  ;;  %v1027_v35 = vmul.f32 %v3274_v7, %v1026_v58  ;;  %v603_v31 = vmul.f32 %v515_v51, %v2075_v39 }
 0x1ab   :  { %v1366_v46 = vmul.f32 %v1041_v22, %v4057_v21  ;;  %1696 = vrsqrt.f32 %v3333_v52  ;;  %v3353_v59 = vadd.f32 1e-06, %v599_v2  ;;  %v3357_v30 = vadd.f32 1e-06, %v604_v5  ;;  %v3420_v0 = vpop.xlane.xlu1 %526 }
 0x1ac   :  { %v1497_v50 = vadd.f32 %v3279_v62, %v1429_v43  ;;  %v1031_v48 = vsel %vm1030_vm6, %v3274_v7, %v1027_v35  ;;  %1698 = vrsqrt.f32 %v3335_v14  ;;  %v3359_v3 = vadd.f32 1e-06, %v603_v31 }
 0x1ad   :  { %v1695_v37 = vpop.eup %1694  ;;  %v1434_v47 = vmul.f32 %v3265_v9, %v1366_v46  ;;  %v1365_v24 = vmul.f32 %v1031_v48, %v4058_v36  ;;  %1700 = vrsqrt.f32 %v3353_v59  ;;  %v602_v41 = vmul.f32 %v513_v54, %v2075_v39  ;;  %v519_v38 = vpop.xlane.xlu0 %518  ;;  %v4060_v36 = vld [vmem:[#allocation51_spill] sm:$0xff] }
 0x1ae   :  { %1561 = vst [vmem:[#allocation7 + $0xe8] sm:$0xff] %v1497_v50  ;;  %v1013_v4 = vmul.f32 %v1695_v37, %v3311_v26  ;;  %1702 = vrsqrt.f32 %v3357_v30  ;;  %vm1018_vm7 = vweird.f32 %v3311_v26  ;;  %v607_v28 = vmul.f32 %v523_v1, %v2075_v39  ;;  %v3386_v8 = vpop.xlane.xlu2 %528  ;;  %v4059_v26 = vld [vmem:[#allocation50_spill] sm:$0xff] }
 0x1af   :  { %v1502_v45 = vadd.f32 %v3279_v62, %v1434_v47  ;;  %v1433_v7 = vmul.f32 %v3265_v9, %v1365_v24  ;;  %1704 = vrsqrt.f32 %v3359_v3  ;;  %v606_v11 = vmul.f32 %v521_v42, %v2075_v39 }
 0x1b0   :  { %v1014_v17 = vmul.f32 %v1695_v37, %v1013_v4  ;;  %vm1068_vm8 = vweird.f32 %v3333_v52  ;;  %v3379_v34 = vadd.f32 1e-06, %v602_v41  ;;  %vm1019_vm9 = vweird.f32 %v1695_v37 }
 0x1b1   :  { %v3368_v56 = vpop.eup %1696  ;;  %1566 = vst [vmem:[#allocation7 + $0x110] sm:$0xff] %v1502_v45  ;;  %v1501_v44 = vadd.f32 %v3279_v62, %v1433_v7  ;;  %vm1058_vm10 = vweird.f32 %v3335_v14  ;;  %v3384_v23 = vadd.f32 1e-06, %v607_v28  ;;  %v3393_v40 = vmul.f32 %v519_v38, %v2075_v39  ;;  %vm1020_vm14 = vmor %vm1018_vm7, %vm1019_vm9 }
 0x1b2   :  { %v3374_v16 = vpop.eup %1698  ;;  %v1015_v32 = vmul.f32 0.5, %v1014_v17  ;;  %v1063_v49 = vmul.f32 %v3368_v56, %v3333_v52  ;;  %1706 = vrsqrt.f32 %v3379_v34  ;;  %vm1069_vm11 = vweird.f32 %v3368_v56 }
 0x1b3   :  { %1565 = vst [vmem:[#allocation7 + $0x108] sm:$0xff] %v1501_v44  ;;  %v1053_v33 = vmul.f32 %v3374_v16, %v3335_v14  ;;  %v3388_v63 = vpop.eup %1700  ;;  %vm1048_vm12 = vweird.f32 %v3353_v59  ;;  %v3402_v19 = vadd.f32 1e-06, %v606_v11  ;;  %vm1098_vm13 = vweird.f32 %v3357_v30  ;;  %vm1070_vm3 = vmor %vm1068_vm8, %vm1069_vm11  ;;  %v4061_v14 = vld [vmem:[#allocation13_spill] sm:$0xff] }
 0x1b4   :  { %v1016_v57 = vsub.f32 1.5, %v1015_v32  ;;  %v1064_v29 = vmul.f32 %v3368_v56, %v1063_v49  ;;  %v3395_v27 = vpop.eup %1702  ;;  %v1043_v53 = vmul.f32 %v3388_v63, %v3353_v59  ;;  %1708 = vrsqrt.f32 %v3384_v23  ;;  %v4062_v32 = vld [vmem:[#allocation11_spill] sm:$0xff] }
 0x1b5   :  { %v1054_v51 = vmul.f32 %v3374_v16, %v1053_v33  ;;  %v3404_v10 = vpop.eup %1704  ;;  %v1093_v12 = vmul.f32 %v3395_v27, %v3357_v30  ;;  %vm1059_vm15 = vweird.f32 %v3374_v16  ;;  %vm1049_vm0 = vweird.f32 %v3388_v63  ;;  %v525_v45 = vpop.xlane.xlu0 %524 }
 0x1b6   :  { %v1017_v18 = vmul.f32 %v1695_v37, %v1016_v57  ;;  %v1065_v13 = vmul.f32 0.5, %v1064_v29  ;;  %v1044_v60 = vmul.f32 %v3388_v63, %v1043_v53  ;;  %v1083_v55 = vmul.f32 %v3404_v10, %v3359_v3  ;;  %vm1060_vm4 = vmor %vm1058_vm10, %vm1059_vm15  ;;  %v3450_v7 = vpop.xlane.xlu2 %534  ;;  %v4063_v57 = vld [vmem:[#allocation15_spill] sm:$0xff] }
 0x1b7   :  { %v1055_v20 = vmul.f32 0.5, %v1054_v51  ;;  %v1094_v15 = vmul.f32 %v3395_v27, %v1093_v12  ;;  %vm1088_vm1 = vweird.f32 %v3359_v3  ;;  %vm1099_vm2 = vweird.f32 %v3395_v27  ;;  %vm1050_vm7 = vmor %vm1048_vm12, %vm1049_vm0 }
 0x1b8   :  { %v1021_v54 = vsel %vm1020_vm14, %v1695_v37, %v1017_v18  ;;  %v1066_v25 = vsub.f32 1.5, %v1065_v13  ;;  %v1045_v2 = vmul.f32 0.5, %v1044_v60  ;;  %v1084_v5 = vmul.f32 %v3404_v10, %v1083_v55  ;;  %v3424_v1 = vpop.eup %1706  ;;  %vm1100_vm8 = vmor %vm1098_vm13, %vm1099_vm2  ;;  %v4064_v55 = vld [vmem:[#allocation16_spill] sm:$0xff] }
 0x1b9   :  { %v1364_v6 = vmul.f32 %v1021_v54, %v4059_v26  ;;  %v1056_v58 = vsub.f32 1.5, %v1055_v20  ;;  %v1095_v22 = vmul.f32 0.5, %v1094_v15  ;;  %1710 = vrsqrt.f32 %v3402_v19  ;;  %v533_v20 = vpop.xlane.xlu1 %532 }
 0x1ba   :  { %v1067_v43 = vmul.f32 %v3368_v56, %v1066_v25  ;;  %v1046_v21 = vsub.f32 1.5, %v1045_v2  ;;  %v1085_v46 = vmul.f32 0.5, %v1084_v5  ;;  %v3435_v50 = vpop.eup %1708  ;;  %vm1089_vm5 = vweird.f32 %v3404_v10 }
 0x1bb   :  { %v1432_v35 = vmul.f32 %v3265_v9, %v1364_v6  ;;  %v1057_v31 = vmul.f32 %v3374_v16, %v1056_v58  ;;  %v1096_v37 = vsub.f32 1.5, %v1095_v22  ;;  %v1073_v52 = vmul.f32 %v3424_v1, %v3379_v34  ;;  %vm1090_vm11 = vmor %vm1088_vm1, %vm1089_vm5 }
 0x1bc   :  { %v1071_v48 = vsel %vm1070_vm3, %v3368_v56, %v1067_v43  ;;  %v1047_v42 = vmul.f32 %v3388_v63, %v1046_v21  ;;  %vm1078_vm6 = vweird.f32 %v3379_v34  ;;  %v1086_v56 = vsub.f32 1.5, %v1085_v46 }
 0x1bd   :  { %v1500_v47 = vadd.f32 %v3279_v62, %v1432_v35  ;;  %v1369_v24 = vmul.f32 %v1071_v48, %v4060_v36  ;;  %v1061_v4 = vsel %vm1060_vm4, %v3374_v16, %v1057_v31  ;;  %v1097_v41 = vmul.f32 %v3395_v27, %v1096_v37  ;;  %v531_v34 = vpop.xlane.xlu0 %530  ;;  %v4065_v48 = vld [vmem:[#allocation12_spill] sm:$0xff] }
 0x1be   :  { %v1368_v17 = vmul.f32 %v1061_v4, %v4061_v14  ;;  %v1074_v44 = vmul.f32 %v3424_v1, %v1073_v52  ;;  %v1051_v11 = vsel %vm1050_vm7, %v3388_v63, %v1047_v42  ;;  %vm1079_vm9 = vweird.f32 %v3424_v1  ;;  %v541_v46 = vpop.xlane.xlu2 %540  ;;  %v4066_v4 = vld [vmem:[#allocation18_spill] sm:$0xff] }
 0x1bf   :  { %1564 = vst [vmem:[#allocation7 + $0x100] sm:$0xff] %v1500_v47  ;;  %v1437_v28 = vmul.f32 %v3265_v9, %v1369_v24  ;;  %v1123_v59 = vmul.f32 %v3435_v50, %v3384_v23  ;;  %vm1128_vm10 = vweird.f32 %v3384_v23  ;;  %v3469_v38 = vpop.eup %1710  ;;  %v1367_v49 = vmul.f32 %v1051_v11, %v4062_v32  ;;  %vm1080_vm13 = vmor %vm1078_vm6, %vm1079_vm9 }
 0x1c0   :  { %v1436_v16 = vmul.f32 %v3265_v9, %v1368_v17  ;;  %v1101_v33 = vsel %vm1100_vm8, %v3395_v27, %v1097_v41  ;;  %v1087_v63 = vmul.f32 %v3404_v10, %v1086_v56  ;;  %v1075_v51 = vmul.f32 0.5, %v1074_v44  ;;  %v4067_v44 = vld [vmem:[#allocation19_spill] sm:$0xff] }
 0x1c1   :  { %v1505_v30 = vadd.f32 %v3279_v62, %v1437_v28  ;;  %v1372_v29 = vmul.f32 %v1101_v33, %v4063_v57  ;;  %v1124_v53 = vmul.f32 %v3435_v50, %v1123_v59  ;;  %v1435_v13 = vmul.f32 %v3265_v9, %v1367_v49  ;;  %v539_v56 = vpop.xlane.xlu1 %538 }
 0x1c2   :  { %v1504_v18 = vadd.f32 %v3279_v62, %v1436_v16  ;;  %v1091_v27 = vsel %vm1090_vm11, %v3404_v10, %v1087_v63  ;;  %v1113_v12 = vmul.f32 %v3469_v38, %v3402_v19  ;;  %v1076_v3 = vsub.f32 1.5, %v1075_v51 }
 0x1c3   :  { %1569 = vst [vmem:[#allocation7 + $0x128] sm:$0xff] %v1505_v30  ;;  %v1440_v60 = vmul.f32 %v3265_v9, %v1372_v29  ;;  %v1371_v54 = vmul.f32 %v1091_v27, %v4064_v55  ;;  %v1125_v25 = vmul.f32 0.5, %v1124_v53  ;;  %v1503_v15 = vadd.f32 %v3279_v62, %v1435_v13 }
 0x1c4   :  { %1568 = vst [vmem:[#allocation7 + $0x120] sm:$0xff] %v1504_v18  ;;  %vm1129_vm12 = vweird.f32 %v3435_v50  ;;  %v1114_v26 = vmul.f32 %v3469_v38, %v1113_v12  ;;  %v3493_v10 = vadd.f32 1e-06, %v3393_v40  ;;  %v1077_v2 = vmul.f32 %v3424_v1, %v1076_v3 }
 0x1c5   :  { %v1508_v6 = vadd.f32 %v3279_v62, %v1440_v60  ;;  %v1439_v58 = vmul.f32 %v3265_v9, %v1371_v54  ;;  %v1126_v5 = vsub.f32 1.5, %v1125_v25  ;;  %1567 = vst [vmem:[#allocation7 + $0x118] sm:$0xff] %v1503_v15  ;;  %vm1119_vm14 = vweird.f32 %v3469_v38  ;;  %vm1130_vm15 = vmor %vm1128_vm10, %vm1129_vm12  ;;  %v537_v53 = vpop.xlane.xlu0 %536 }
 0x1c6   :  { %v1115_v43 = vmul.f32 0.5, %v1114_v26  ;;  %1712 = vrsqrt.f32 %v3493_v10  ;;  %v610_v40 = vmul.f32 %v3386_v8, %v2075_v39  ;;  %v1081_v35 = vsel %vm1080_vm13, %v3424_v1, %v1077_v2  ;;  %v547_v18 = vpop.xlane.xlu2 %546 }
 0x1c7   :  { %1572 = vst [vmem:[#allocation7 + $0x140] sm:$0xff] %v1508_v6  ;;  %v1507_v22 = vadd.f32 %v3279_v62, %v1439_v58  ;;  %v1127_v31 = vmul.f32 %v3435_v50, %v1126_v5  ;;  %v609_v21 = vmul.f32 %v3420_v0, %v2075_v39  ;;  %v1370_v37 = vmul.f32 %v1081_v35, %v4065_v48  ;;  %v4068_v48 = vld [vmem:[#allocation14_spill] sm:$0xff] }
 0x1c8   :  { %v1116_v8 = vsub.f32 1.5, %v1115_v43  ;;  %v3516_v52 = vadd.f32 1e-06, %v610_v40  ;;  %v608_v47 = vmul.f32 %v525_v45, %v2075_v39  ;;  %vm1118_vm0 = vweird.f32 %v3402_v19 }
 0x1c9   :  { %1571 = vst [vmem:[#allocation7 + $0x138] sm:$0xff] %v1507_v22  ;;  %v1131_v1 = vsel %vm1130_vm15, %v3435_v50, %v1127_v31  ;;  %v3521_v0 = vadd.f32 1e-06, %v609_v21  ;;  %v613_v36 = vmul.f32 %v3450_v7, %v2075_v39  ;;  %v1438_v24 = vmul.f32 %v3265_v9, %v1370_v37  ;;  %vm1120_vm1 = vmor %vm1118_vm0, %vm1119_vm14  ;;  %v3594_v35 = vpop.xlane.xlu1 %544 }
 0x1ca   :  { %v1375_v23 = vmul.f32 %v1131_v1, %v4066_v4  ;;  %v1117_v42 = vmul.f32 %v3469_v38, %v1116_v8  ;;  %1714 = vrsqrt.f32 %v3516_v52  ;;  %v3532_v50 = vadd.f32 1e-06, %v608_v47 }
 0x1cb   :  { %1716 = vrsqrt.f32 %v3521_v0  ;;  %v612_v19 = vmul.f32 %v533_v20, %v2075_v39  ;;  %v1506_v7 = vadd.f32 %v3279_v62, %v1438_v24  ;;  %v3538_v41 = vadd.f32 1e-06, %v613_v36 }
 0x1cc   :  { %v1713_v45 = vpop.eup %1712  ;;  %v1443_v14 = vmul.f32 %v3265_v9, %v1375_v23  ;;  %v1121_v17 = vsel %vm1120_vm1, %v3469_v38, %v1117_v42  ;;  %1718 = vrsqrt.f32 %v3532_v50  ;;  %v611_v38 = vmul.f32 %v531_v34, %v2075_v39 }
 0x1cd   :  { %v1374_v28 = vmul.f32 %v1121_v17, %v4067_v44  ;;  %v1103_v11 = vmul.f32 %v1713_v45, %v3493_v10  ;;  %1570 = vst [vmem:[#allocation7 + $0x130] sm:$0xff] %v1506_v7  ;;  %1720 = vrsqrt.f32 %v3538_v41  ;;  %v3546_v49 = vadd.f32 1e-06, %v612_v19 }
 0x1ce   :  { %v1511_v59 = vadd.f32 %v3279_v62, %v1443_v14  ;;  %vm1108_vm2 = vweird.f32 %v3493_v10  ;;  %v616_v63 = vmul.f32 %v541_v46, %v2075_v39  ;;  %vm1158_vm3 = vweird.f32 %v3516_v52  ;;  %v4069_v14 = vld [vmem:[#allocation21_spill] sm:$0xff] }
 0x1cf   :  { %v1442_v16 = vmul.f32 %v3265_v9, %v1374_v28  ;;  %v1104_v32 = vmul.f32 %v1713_v45, %v1103_v11  ;;  %vm1109_vm4 = vweird.f32 %v1713_v45  ;;  %vm1148_vm5 = vweird.f32 %v3521_v0  ;;  %v4070_v11 = vld [vmem:[#allocation22_spill] sm:$0xff] }
 0x1d0   :  { %v3549_v33 = vpop.eup %1714  ;;  %1575 = vst [vmem:[#allocation7 + $0x158] sm:$0xff] %v1511_v59  ;;  %1722 = vrsqrt.f32 %v3546_v49  ;;  %v615_v27 = vmul.f32 %v539_v56, %v2075_v39  ;;  %v3567_v55 = vadd.f32 1e-06, %v611_v38  ;;  %v3569_v54 = vadd.f32 1e-06, %v616_v63  ;;  %vm1110_vm9 = vmor %vm1108_vm2, %vm1109_vm4  ;;  %v543_v63 = vpop.xlane.xlu0 %542 }
 0x1d1   :  { %v3553_v30 = vpop.eup %1716  ;;  %v1510_v57 = vadd.f32 %v3279_v62, %v1442_v16  ;;  %v1105_v29 = vmul.f32 0.5, %v1104_v32  ;;  %v1153_v51 = vmul.f32 %v3549_v33, %v3516_v52  ;;  %vm1138_vm6 = vweird.f32 %v3532_v50 }
 0x1d2   :  { %v1143_v13 = vmul.f32 %v3553_v30, %v3521_v0  ;;  %v3564_v12 = vpop.eup %1718  ;;  %v3578_v26 = vmul.f32 %v537_v53, %v2075_v39  ;;  %v3581_v6 = vmul.f32 %v547_v18, %v2075_v39  ;;  %vm1159_vm7 = vweird.f32 %v3549_v33 }
 0x1d3   :  { %1574 = vst [vmem:[#allocation7 + $0x150] sm:$0xff] %v1510_v57  ;;  %v1106_v20 = vsub.f32 1.5, %v1105_v29  ;;  %v1154_v60 = vmul.f32 %v3549_v33, %v1153_v51  ;;  %v3571_v3 = vpop.eup %1720  ;;  %v1133_v15 = vmul.f32 %v3564_v12, %v3532_v50  ;;  %vm1188_vm8 = vweird.f32 %v3538_v41  ;;  %vm1160_vm13 = vmor %vm1158_vm3, %vm1159_vm7  ;;  %v4071_v57 = vld [vmem:[#allocation17_spill] sm:$0xff] }
 0x1d4   :  { %v1144_v25 = vmul.f32 %v3553_v30, %v1143_v13  ;;  %v1183_v5 = vmul.f32 %v3571_v3, %v3538_v41  ;;  %1724 = vrsqrt.f32 %v3567_v55  ;;  %v3592_v22 = vadd.f32 1e-06, %v615_v27  ;;  %v4072_v27 = vld [vmem:[#allocation24_spill] sm:$0xff] }
 0x1d5   :  { %v1107_v58 = vmul.f32 %v1713_v45, %v1106_v20  ;;  %v1155_v2 = vmul.f32 0.5, %v1154_v60  ;;  %v1134_v40 = vmul.f32 %v3564_v12, %v1133_v15  ;;  %1726 = vrsqrt.f32 %v3569_v54  ;;  %v551_v60 = vpop.xlane.xlu1 %550 }
 0x1d6   :  { %v1145_v43 = vmul.f32 0.5, %v1144_v25  ;;  %v1184_v34 = vmul.f32 %v3571_v3, %v1183_v5  ;;  %v3598_v46 = vpop.eup %1722  ;;  %vm1149_vm10 = vweird.f32 %v3553_v30  ;;  %vm1139_vm11 = vweird.f32 %v3564_v12 }
 0x1d7   :  { %v1111_v31 = vsel %vm1110_vm9, %v1713_v45, %v1107_v58  ;;  %v1156_v21 = vsub.f32 1.5, %v1155_v2  ;;  %v1135_v8 = vmul.f32 0.5, %v1134_v40  ;;  %v1173_v36 = vmul.f32 %v3598_v46, %v3546_v49  ;;  %vm1150_vm14 = vmor %vm1148_vm5, %vm1149_vm10 }
 0x1d8   :  { %v1373_v10 = vmul.f32 %v1111_v31, %v4068_v48  ;;  %v1146_v37 = vsub.f32 1.5, %v1145_v43  ;;  %v1185_v1 = vmul.f32 0.5, %v1184_v34  ;;  %vm1178_vm12 = vweird.f32 %v3546_v49  ;;  %vm1140_vm0 = vmor %vm1138_vm6, %vm1139_vm11  ;;  %v4073_v48 = vld [vmem:[#allocation25_spill] sm:$0xff] }
 0x1d9   :  { %v1157_v47 = vmul.f32 %v3549_v33, %v1156_v21  ;;  %v1136_v23 = vsub.f32 1.5, %v1135_v8  ;;  %1728 = vrsqrt.f32 %v3592_v22  ;;  %vm1189_vm15 = vweird.f32 %v3571_v3  ;;  %v553_v8 = vpop.xlane.xlu2 %552 }
 0x1da   :  { %v1441_v24 = vmul.f32 %v3265_v9, %v1373_v10  ;;  %v1147_v4 = vmul.f32 %v3553_v30, %v1146_v37  ;;  %v1186_v19 = vsub.f32 1.5, %v1185_v1  ;;  %v1174_v45 = vmul.f32 %v3598_v46, %v1173_v36  ;;  %v3619_v7 = vpop.eup %1724  ;;  %vm1190_vm2 = vmor %vm1188_vm8, %vm1189_vm15 }
 0x1db   :  { %v1161_v42 = vsel %vm1160_vm13, %v3549_v33, %v1157_v47  ;;  %v1137_v44 = vmul.f32 %v3564_v12, %v1136_v23  ;;  %v3625_v28 = vpop.eup %1726  ;;  %v1163_v32 = vmul.f32 %v3619_v7, %v3567_v55  ;;  %vm1168_vm1 = vweird.f32 %v3567_v55 }
 0x1dc   :  { %v1509_v52 = vadd.f32 %v3279_v62, %v1441_v24  ;;  %v1378_v17 = vmul.f32 %v1161_v42, %v4069_v14  ;;  %v1151_v56 = vsel %vm1150_vm14, %v3553_v30, %v1147_v4  ;;  %v1187_v59 = vmul.f32 %v3571_v3, %v1186_v19  ;;  %v549_v19 = vpop.xlane.xlu0 %548 }
 0x1dd   :  { %v1377_v0 = vmul.f32 %v1151_v56, %v4070_v11  ;;  %v1175_v16 = vmul.f32 0.5, %v1174_v45  ;;  %v1141_v33 = vsel %vm1140_vm0, %v3564_v12, %v1137_v44  ;;  %vm1179_vm3 = vweird.f32 %v3598_v46 }
 0x1de   :  { %1573 = vst [vmem:[#allocation7 + $0x148] sm:$0xff] %v1509_v52  ;;  %v1446_v38 = vmul.f32 %v3265_v9, %v1378_v17  ;;  %v1213_v50 = vmul.f32 %v3625_v28, %v3569_v54  ;;  %v1376_v29 = vmul.f32 %v1141_v33, %v4071_v57  ;;  %v1191_v51 = vsel %vm1190_vm2, %v3571_v3, %v1187_v59  ;;  %vm1180_vm5 = vmor %vm1178_vm12, %vm1179_vm3  ;;  %v4075_v52 = vld [vmem:[#allocation27_spill] sm:$0xff]  ;;  %v4076_v57 = vld [vmem:[#allocation28_spill] sm:$0xff] }
 0x1df   :  { %v1445_v30 = vmul.f32 %v3265_v9, %v1377_v0  ;;  %v1176_v53 = vsub.f32 1.5, %v1175_v16  ;;  %v3648_v18 = vpop.eup %1728  ;;  %v1381_v41 = vmul.f32 %v1191_v51, %v4072_v27  ;;  %v1164_v12 = vmul.f32 %v3619_v7, %v1163_v32 }
 0x1e0   :  { %v1514_v13 = vadd.f32 %v3279_v62, %v1446_v38  ;;  %v1214_v20 = vmul.f32 %v3625_v28, %v1213_v50  ;;  %v1444_v15 = vmul.f32 %v3265_v9, %v1376_v29  ;;  %vm1169_vm4 = vweird.f32 %v3619_v7 }
 0x1e1   :  { %v1513_v25 = vadd.f32 %v3279_v62, %v1445_v30  ;;  %v1177_v58 = vmul.f32 %v3598_v46, %v1176_v53  ;;  %v1449_v3 = vmul.f32 %v3265_v9, %v1381_v41  ;;  %v1165_v2 = vmul.f32 0.5, %v1164_v12  ;;  %vm1170_vm8 = vmor %vm1168_vm1, %vm1169_vm4 }
 0x1e2   :  { %1578 = vst [vmem:[#allocation7 + $0x170] sm:$0xff] %v1514_v13  ;;  %v1215_v5 = vmul.f32 0.5, %v1214_v20  ;;  %v1203_v43 = vmul.f32 %v3648_v18, %v3592_v22  ;;  %v1512_v40 = vadd.f32 %v3279_v62, %v1444_v15  ;;  %vm1219_vm6 = vweird.f32 %v3625_v28  ;;  %v559_v13 = vpop.xlane.xlu2 %558 }
 0x1e3   :  { %1577 = vst [vmem:[#allocation7 + $0x168] sm:$0xff] %v1513_v25  ;;  %v1181_v31 = vsel %vm1180_vm5, %v3598_v46, %v1177_v58  ;;  %v3669_v21 = vadd.f32 1e-06, %v3578_v26  ;;  %v1517_v34 = vadd.f32 %v3279_v62, %v1449_v3  ;;  %v1166_v10 = vsub.f32 1.5, %v1165_v2 }
 0x1e4   :  { %v1380_v49 = vmul.f32 %v1181_v31, %v4073_v48  ;;  %v1216_v37 = vsub.f32 1.5, %v1215_v5  ;;  %1576 = vst [vmem:[#allocation7 + $0x160] sm:$0xff] %v1512_v40  ;;  %vm1218_vm7 = vweird.f32 %v3569_v54  ;;  %v1204_v47 = vmul.f32 %v3648_v18, %v1203_v43  ;;  %v555_v40 = vpop.xlane.xlu0 %554 }
 0x1e5   :  { %1730 = vrsqrt.f32 %v3669_v21  ;;  %v3677_v46 = vadd.f32 1e-06, %v3581_v6  ;;  %1581 = vst [vmem:[#allocation7 + $0x188] sm:$0xff] %v1517_v34  ;;  %v1167_v1 = vmul.f32 %v3619_v7, %v1166_v10  ;;  %v618_v54 = vmul.f32 %v3594_v35, %v2075_v39  ;;  %vm1220_vm9 = vmor %vm1218_vm7, %vm1219_vm6  ;;  %v4074_v35 = vld [vmem:[#allocation20_spill] sm:$0xff] }
 0x1e6   :  { %v1448_v26 = vmul.f32 %v3265_v9, %v1380_v49  ;;  %v1217_v36 = vmul.f32 %v3625_v28, %v1216_v37  ;;  %v1205_v6 = vmul.f32 0.5, %v1204_v47  ;;  %vm1209_vm10 = vweird.f32 %v3648_v18 }
 0x1e7   :  { %1732 = vrsqrt.f32 %v3677_v46  ;;  %v617_v24 = vmul.f32 %v543_v63, %v2075_v39  ;;  %v1171_v55 = vsel %vm1170_vm8, %v3619_v7, %v1167_v1  ;;  %v3696_v42 = vadd.f32 1e-06, %v618_v54 }
 0x1e8   :  { %v1516_v4 = vadd.f32 %v3279_v62, %v1448_v26  ;;  %v1221_v23 = vsel %vm1220_vm9, %v3625_v28, %v1217_v36  ;;  %v1379_v45 = vmul.f32 %v1171_v55, %v4074_v35  ;;  %v1206_v17 = vsub.f32 1.5, %v1205_v6  ;;  %v557_v28 = vpop.xlane.xlu1 %556 }
 0x1e9   :  { %v1384_v14 = vmul.f32 %v1221_v23, %v4075_v52  ;;  %v3700_v56 = vadd.f32 1e-06, %v617_v24  ;;  %vm1208_vm11 = vweird.f32 %v3592_v22  ;;  %1734 = vrsqrt.f32 %v3696_v42 }
 0x1ea   :  { %1580 = vst [vmem:[#allocation7 + $0x180] sm:$0xff] %v1516_v4  ;;  %v622_v44 = vmul.f32 %v553_v8, %v2075_v39  ;;  %v621_v7 = vmul.f32 %v551_v60, %v2075_v39  ;;  %v1447_v0 = vmul.f32 %v3265_v9, %v1379_v45  ;;  %v1207_v16 = vmul.f32 %v3648_v18, %v1206_v17  ;;  %vm1210_vm12 = vmor %vm1208_vm11, %vm1209_vm10 }
 0x1eb   :  { %v3706_v11 = vpop.eup %1730  ;;  %v1452_v59 = vmul.f32 %v3265_v9, %v1384_v14  ;;  %1736 = vrsqrt.f32 %v3700_v56  ;;  %vm1198_vm13 = vweird.f32 %v3669_v21  ;;  %vm1248_vm14 = vweird.f32 %v3677_v46 }
 0x1ec   :  { %v1193_v22 = vmul.f32 %v3706_v11, %v3669_v21  ;;  %v3716_v32 = vadd.f32 1e-06, %v622_v44  ;;  %v1515_v33 = vadd.f32 %v3279_v62, %v1447_v0  ;;  %v1211_v63 = vsel %vm1210_vm12, %v3648_v18, %v1207_v16  ;;  %v4077_v21 = vld [vmem:[#allocation23_spill] sm:$0xff] }
 0x1ed   :  { %v3718_v38 = vpop.eup %1732  ;;  %v1520_v50 = vadd.f32 %v3279_v62, %v1452_v59  ;;  %v3723_v30 = vadd.f32 1e-06, %v621_v7  ;;  %v1383_v29 = vmul.f32 %v1211_v63, %v4076_v57  ;;  %v620_v27 = vmul.f32 %v549_v19, %v2075_v39  ;;  %v4078_v7 = vld [vmem:[#allocation30_spill] sm:$0xff] }
 0x1ee   :  { %v1194_v51 = vmul.f32 %v3706_v11, %v1193_v22  ;;  %v1243_v53 = vmul.f32 %v3718_v38, %v3677_v46  ;;  %1579 = vst [vmem:[#allocation7 + $0x178] sm:$0xff] %v1515_v33  ;;  %1738 = vrsqrt.f32 %v3716_v32  ;;  %vm1199_vm15 = vweird.f32 %v3706_v11 }
 0x1ef   :  { %v3733_v18 = vpop.eup %1734  ;;  %1584 = vst [vmem:[#allocation7 + $0x1a0] sm:$0xff] %v1520_v50  ;;  %v1451_v41 = vmul.f32 %v3265_v9, %v1383_v29  ;;  %1740 = vrsqrt.f32 %v3723_v30  ;;  %vm1238_vm0 = vweird.f32 %v3696_v42  ;;  %v3744_v15 = vadd.f32 1e-06, %v620_v27  ;;  %vm1200_vm5 = vmor %vm1198_vm13, %vm1199_vm15 }
 0x1f0   :  { %v1195_v12 = vmul.f32 0.5, %v1194_v51  ;;  %v1244_v20 = vmul.f32 %v3718_v38, %v1243_v53  ;;  %v1233_v25 = vmul.f32 %v3733_v18, %v3696_v42  ;;  %v625_v58 = vmul.f32 %v559_v13, %v2075_v39  ;;  %v563_v10 = vpop.xlane.xlu1 %562  ;;  %v4079_v42 = vld [vmem:[#allocation31_spill] sm:$0xff]  ;;  %v4080_v13 = vld [vmem:[#allocation26_spill] sm:$0xff] }
 0x1f1   :  { %v3738_v60 = vpop.eup %1736  ;;  %v1519_v3 = vadd.f32 %v3279_v62, %v1451_v41  ;;  %vm1228_vm1 = vweird.f32 %v3700_v56  ;;  %vm1249_vm2 = vweird.f32 %v3718_v38  ;;  %vm1239_vm3 = vweird.f32 %v3733_v18 }
 0x1f2   :  { %v1196_v2 = vsub.f32 1.5, %v1195_v12  ;;  %v1245_v5 = vmul.f32 0.5, %v1244_v20  ;;  %v1223_v43 = vmul.f32 %v3738_v60, %v3700_v56  ;;  %v1234_v31 = vmul.f32 %v3733_v18, %v1233_v25  ;;  %vm1250_vm7 = vmor %vm1248_vm14, %vm1249_vm2 }
 0x1f3   :  { %1742 = vrsqrt.f32 %v3744_v15  ;;  %1583 = vst [vmem:[#allocation7 + $0x198] sm:$0xff] %v1519_v3  ;;  %vm1229_vm4 = vweird.f32 %v3738_v60  ;;  %v3764_v47 = vadd.f32 1e-06, %v625_v58  ;;  %v624_v26 = vmul.f32 %v557_v28, %v2075_v39  ;;  %vm1240_vm10 = vmor %vm1238_vm0, %vm1239_vm3 }
 0x1f4   :  { %v1197_v34 = vmul.f32 %v3706_v11, %v1196_v2  ;;  %v1246_v48 = vsub.f32 1.5, %v1245_v5  ;;  %v1224_v49 = vmul.f32 %v3738_v60, %v1223_v43  ;;  %v3758_v37 = vpop.eup %1738  ;;  %v1235_v8 = vmul.f32 0.5, %v1234_v31  ;;  %vm1230_vm12 = vmor %vm1228_vm1, %vm1229_vm4 }
 0x1f5   :  { %v623_v1 = vmul.f32 %v555_v40, %v2075_v39  ;;  %v1741_v36 = vpop.eup %1740  ;;  %v1273_v4 = vmul.f32 %v3758_v37, %v3716_v32  ;;  %vm1278_vm6 = vweird.f32 %v3716_v32  ;;  %vm1268_vm8 = vweird.f32 %v3723_v30  ;;  %v4081_v32 = vld [vmem:[#allocation33_spill] sm:$0xff] }
 0x1f6   :  { %v1201_v54 = vsel %vm1200_vm5, %v3706_v11, %v1197_v34  ;;  %v1247_v6 = vmul.f32 %v3718_v38, %v1246_v48  ;;  %v1225_v24 = vmul.f32 0.5, %v1224_v49  ;;  %v1236_v23 = vsub.f32 1.5, %v1235_v8  ;;  %v4082_v34 = vld [vmem:[#allocation34_spill] sm:$0xff] }
 0x1f7   :  { %v1382_v55 = vmul.f32 %v1201_v54, %v4077_v21  ;;  %v1263_v19 = vmul.f32 %v1741_v36, %v3723_v30  ;;  %v627_v35 = vmul.f32 %v563_v10, %v2075_v39  ;;  %v1274_v14 = vmul.f32 %v3758_v37, %v1273_v4  ;;  %v561_v30 = vpop.xlane.xlu0 %560  ;;  %v4083_v54 = vld [vmem:[#allocation29_spill] sm:$0xff] }
 0x1f8   :  { %v1251_v45 = vsel %vm1250_vm7, %v3718_v38, %v1247_v6  ;;  %v1226_v52 = vsub.f32 1.5, %v1225_v24  ;;  %vm1279_vm9 = vweird.f32 %v3758_v37  ;;  %v1237_v28 = vmul.f32 %v3733_v18, %v1236_v23 }
 0x1f9   :  { %v1743_v17 = vpop.eup %1742  ;;  %v1450_v44 = vmul.f32 %v3265_v9, %v1382_v55  ;;  %v1387_v46 = vmul.f32 %v1251_v45, %v4078_v7  ;;  %v1264_v11 = vmul.f32 %v1741_v36, %v1263_v19  ;;  %v1275_v59 = vmul.f32 0.5, %v1274_v14  ;;  %vm1280_vm14 = vmor %vm1278_vm6, %vm1279_vm9 }
 0x1fa   :  { %v1227_v0 = vmul.f32 %v3738_v60, %v1226_v52  ;;  %vm1269_vm11 = vweird.f32 %v1741_v36  ;;  %v1253_v16 = vmul.f32 %v1743_v17, %v3744_v15  ;;  %v1241_v33 = vsel %vm1240_vm10, %v3733_v18, %v1237_v28 }
 0x1fb   :  { %v1518_v22 = vadd.f32 %v3279_v62, %v1450_v44  ;;  %v1455_v38 = vmul.f32 %v3265_v9, %v1387_v46  ;;  %v1265_v50 = vmul.f32 0.5, %v1264_v11  ;;  %v1386_v63 = vmul.f32 %v1241_v33, %v4079_v42  ;;  %vm1270_vm15 = vmor %vm1268_vm8, %vm1269_vm11  ;;  %v4084_v42 = vld [vmem:[#allocation36_spill] sm:$0xff] }
 0x1fc   :  { %v1231_v57 = vsel %vm1230_vm12, %v3738_v60, %v1227_v0  ;;  %v1276_v29 = vsub.f32 1.5, %v1275_v59  ;;  %v1254_v51 = vmul.f32 %v1743_v17, %v1253_v16  ;;  %1744 = vrsqrt.f32 %v3764_v47 }
 0x1fd   :  { %1582 = vst [vmem:[#allocation7 + $0x190] sm:$0xff] %v1518_v22  ;;  %v1523_v53 = vadd.f32 %v3279_v62, %v1455_v38  ;;  %v1385_v27 = vmul.f32 %v1231_v57, %v4080_v13  ;;  %v1266_v41 = vsub.f32 1.5, %v1265_v50  ;;  %v1454_v18 = vmul.f32 %v3265_v9, %v1386_v63 }
 0x1fe   :  { %v1277_v56 = vmul.f32 %v3758_v37, %v1276_v29  ;;  %v1255_v12 = vmul.f32 0.5, %v1254_v51  ;;  %vm1259_vm13 = vweird.f32 %v1743_v17  ;;  %v3812_v25 = vadd.f32 1e-06, %v624_v26 }
 0x1ff   :  { %1587 = vst [vmem:[#allocation7 + $0x1b8] sm:$0xff] %v1523_v53  ;;  %v1453_v20 = vmul.f32 %v3265_v9, %v1385_v27  ;;  %v1267_v60 = vmul.f32 %v1741_v36, %v1266_v41  ;;  %v3814_v58 = vadd.f32 1e-06, %v623_v1  ;;  %v1522_v3 = vadd.f32 %v3279_v62, %v1454_v18 }
 0x200   :  { %v1281_v2 = vsel %vm1280_vm14, %v3758_v37, %v1277_v56  ;;  %v1256_v5 = vsub.f32 1.5, %v1255_v12  ;;  %v3821_v9 = vadd.f32 1e-06, %v627_v35  ;;  %1746 = vrsqrt.f32 %v3812_v25  ;;  %v3829_v37 = vld [vmem:[#allocation5] ss:$0 sm:$0xff]  ;;  %v4085_v12 = vld [vmem:[#allocation37_spill] sm:$0xff] }
 0x201   :  { %v1521_v43 = vadd.f32 %v3279_v62, %v1453_v20  ;;  %v1390_v40 = vmul.f32 %v1281_v2, %v4081_v32  ;;  %v1271_v31 = vsel %vm1270_vm15, %v1741_v36, %v1267_v60  ;;  %1586 = vst [vmem:[#allocation7 + $0x1b0] sm:$0xff] %v1522_v3  ;;  %vm1258_vm0 = vweird.f32 %v3744_v15  ;;  %v3839_v15 = vld [vmem:[%s3882_s2] ss:$0 sm:$0xff]  ;;  %s1841_s2 = smov [#allocation7]  }
 0x202   :  { %v1389_v48 = vmul.f32 %v1271_v31, %v4082_v34  ;;  %v1257_v49 = vmul.f32 %v1743_v17, %v1256_v5  ;;  %1748 = vrsqrt.f32 %v3814_v58  ;;  %v1745_v10 = vpop.eup %1744  ;;  %vm1260_vm1 = vmor %vm1258_vm0, %vm1259_vm13  ;;  %v626_v24 = vmul.f32 %v561_v30, %v2075_v39  ;;  %s1600_s28 = sshll.u32 %s1841_s2, 4  ;;  %s1601_s28 = int_to_ptr.vmem [resolvable:$true] %s1600_s28 }
 0x203   :  { %1585 = vst [vmem:[#allocation7 + $0x1a8] sm:$0xff] %v1521_v43  ;;  %v1458_v62 = vmul.f32 %v3829_v37, %v1390_v40  ;;  %1750 = vrsqrt.f32 %v3821_v9  ;;  %v1303_v1 = vmul.f32 %v1745_v10, %v3764_v47  ;;  %vm1309_vm2 = vweird.f32 %v1745_v10 }
 0x204   :  { %v1457_v8 = vmul.f32 %v3829_v37, %v1389_v48  ;;  %v1261_v26 = vsel %vm1260_vm1, %v1743_v17, %v1257_v49  ;;  %v3846_v19 = vadd.f32 1e-06, %v626_v24  ;;  %vm1308_vm3 = vweird.f32 %v3764_v47 }
 0x205   :  { %v1526_v36 = vadd.f32 %v3839_v15, %v1458_v62  ;;  %v1388_v6 = vmul.f32 %v1261_v26, %v4083_v54  ;;  %v1304_v21 = vmul.f32 %v1745_v10, %v1303_v1  ;;  %vm1310_vm4 = vmor %vm1308_vm3, %vm1309_vm2  ;;  %vm1298_vm6 = vweird.f32 %v3812_v25 }
 0x206   :  { %v1525_v4 = vadd.f32 %v3839_v15, %v1457_v8  ;;  %v1747_v55 = vpop.eup %1746  ;;  %1752 = vrsqrt.f32 %v3846_v19  ;;  %vm1288_vm10 = vweird.f32 %v3814_v58  ;;  %vm1328_vm12 = vweird.f32 %v3821_v9 }
 0x207   :  { %1590 = vst [vmem:[#allocation7 + $0x1d0] sm:$0xff] %v1526_v36  ;;  %v1456_v23 = vmul.f32 %v3829_v37, %v1388_v6  ;;  %v1305_v45 = vmul.f32 0.5, %v1304_v21  ;;  %v1293_v52 = vmul.f32 %v1747_v55, %v3812_v25  ;;  %vm1299_vm5 = vweird.f32 %v1747_v55  ;;  %v4086_v25 = vld [vmem:[#allocation32_spill] sm:$0xff] }
 0x208   :  { %v1749_v35 = vpop.eup %1748  ;;  %1589 = vst [vmem:[#allocation7 + $0x1c8] sm:$0xff] %v1525_v4  ;;  %vm1300_vm9 = vmor %vm1298_vm6, %vm1299_vm5  ;;  %vm1318_vm15 = vweird.f32 %v3846_v19 }
 0x209   :  { %v1751_v14 = vpop.eup %1750  ;;  %v1524_v17 = vadd.f32 %v3839_v15, %v1456_v23  ;;  %v1283_v44 = vmul.f32 %v1749_v35, %v3814_v58  ;;  %v1306_v39 = vsub.f32 1.5, %v1305_v45  ;;  %v1294_v7 = vmul.f32 %v1747_v55, %v1293_v52 }
 0x20a   :  { %v1323_v46 = vmul.f32 %v1751_v14, %v3821_v9  ;;  %vm1289_vm7 = vweird.f32 %v1749_v35  ;;  %vm1329_vm8 = vweird.f32 %v1751_v14 }
 0x20b   :  { %1588 = vst [vmem:[#allocation7 + $0x1c0] sm:$0xff] %v1524_v17  ;;  %v1284_v28 = vmul.f32 %v1749_v35, %v1283_v44  ;;  %v1307_v11 = vmul.f32 %v1745_v10, %v1306_v39  ;;  %v1295_v0 = vmul.f32 0.5, %v1294_v7  ;;  %vm1290_vm11 = vmor %vm1288_vm10, %vm1289_vm7 }
 0x20c   :  { %v1324_v59 = vmul.f32 %v1751_v14, %v1323_v46  ;;  %v1753_v50 = vpop.eup %1752  ;;  %vm1330_vm13 = vmor %vm1328_vm12, %vm1329_vm8 }
 0x20d   :  { %v1285_v16 = vmul.f32 0.5, %v1284_v28  ;;  %v1311_v22 = vsel %vm1310_vm4, %v1745_v10, %v1307_v11  ;;  %v1296_v38 = vsub.f32 1.5, %v1295_v0  ;;  %v1313_v47 = vmul.f32 %v1753_v50, %v3846_v19 }
 0x20e   :  { %v1325_v33 = vmul.f32 0.5, %v1324_v59  ;;  %v1393_v63 = vmul.f32 %v1311_v22, %v4084_v42  ;;  %vm1319_vm14 = vweird.f32 %v1753_v50 }
 0x20f   :  { %v1286_v57 = vsub.f32 1.5, %v1285_v16  ;;  %v1297_v29 = vmul.f32 %v1747_v55, %v1296_v38  ;;  %v1314_v18 = vmul.f32 %v1753_v50, %v1313_v47  ;;  %vm1320_vm0 = vmor %vm1318_vm15, %vm1319_vm14 }
 0x210   :  { %v1326_v51 = vsub.f32 1.5, %v1325_v33  ;;  %v1461_v53 = vmul.f32 %v3829_v37, %v1393_v63 }
 0x211   :  { %v1287_v13 = vmul.f32 %v1749_v35, %v1286_v57  ;;  %v1301_v27 = vsel %vm1300_vm9, %v1747_v55, %v1297_v29  ;;  %v1315_v5 = vmul.f32 0.5, %v1314_v18 }
 0x212   :  { %v1327_v41 = vmul.f32 %v1751_v14, %v1326_v51  ;;  %v1529_v56 = vadd.f32 %v3839_v15, %v1461_v53  ;;  %v1392_v20 = vmul.f32 %v1301_v27, %v4085_v12 }
 0x213   :  { %v1291_v60 = vsel %vm1290_vm11, %v1749_v35, %v1287_v13  ;;  %v1316_v40 = vsub.f32 1.5, %v1315_v5 }
 0x214   :  { %v1391_v3 = vmul.f32 %v1291_v60, %v4086_v25  ;;  %v1331_v2 = vsel %vm1330_vm13, %v1751_v14, %v1327_v41  ;;  %1593 = vst [vmem:[#allocation7 + $0x1e8] sm:$0xff] %v1529_v56  ;;  %v1460_v43 = vmul.f32 %v3829_v37, %v1392_v20 }
 0x215   :  { %v1395_v58 = vmul.f32 %v1331_v2, %v2669_v61  ;;  %v1317_v48 = vmul.f32 %v1753_v50, %v1316_v40  ;;  %v4087_v61 = vld [vmem:[#allocation35_spill] sm:$0xff] }
 0x216   :  { %v1459_v32 = vmul.f32 %v3829_v37, %v1391_v3  ;;  %v1528_v9 = vadd.f32 %v3839_v15, %v1460_v43 }
 0x217   :  { %v1463_v31 = vmul.f32 %v3829_v37, %v1395_v58  ;;  %v1321_v30 = vsel %vm1320_vm0, %v1753_v50, %v1317_v48 }
 0x218   :  { %v1527_v34 = vadd.f32 %v3839_v15, %v1459_v32  ;;  %1592 = vst [vmem:[#allocation7 + $0x1e0] sm:$0xff] %v1528_v9  ;;  %v1394_v10 = vmul.f32 %v1321_v30, %v4087_v61 }
 0x219   :  { %v1531_v49 = vadd.f32 %v3839_v15, %v1463_v31 }
 0x21a   :  { %1591 = vst [vmem:[#allocation7 + $0x1d8] sm:$0xff] %v1527_v34  ;;  %v1462_v62 = vmul.f32 %v3829_v37, %v1394_v10 }
 0x21b   :  { %1595 = vst [vmem:[#allocation7 + $0x1f8] sm:$0xff] %v1531_v49 }
 0x21c   :  { %v1530_v8 = vadd.f32 %v3839_v15, %v1462_v62 }
 0x21e   :  { %1594 = vst [vmem:[#allocation7 + $0x1f0] sm:$0xff] %v1530_v8 }
 0x21f   :  { %1608 = dma.vmem_to_hbm [thread:$0]  %s1601_s28, 8192, %s1603_s4, [#allocation4], %s1837_s20, %s1837_s20, %s1838_s21  }
 0x220   :  { %1834 = dma.done.wait [#allocation4], 8192  }
 0x221   :  { %1835 = vsyncadd [#allocation4], 4294959104 }
 0x222   :  { %1613 = vsyncpa [#allocation3], 1 }
 0x223   :  { %1614 = vsyncpa [#allocation6], 1 }
 0x224   :  { %1615 = vsyncpa [#allocation4], 1 }

</bundles_post_ra>
